<compile_context>
chip_gen: v7x
topology: tpu7x:2x2x1
jax: 0.10.0
libtpu: 0.0.40
codegen_flags: <defaults>
</compile_context>

<pallas_src>
import functools

import jax
import jax.numpy as jnp
from jax.experimental import pallas as pl
from jax.experimental.pallas import tpu as pltpu

IN_DIM = 28 * 28          # 784
HID = 512
OUT_DIM = 10
OUT_PAD = 128             # lane-dense padded output width


def mlp_kernel(x_ref, w1_ref, b1_ref, w2_ref, b2_ref, w3_ref, b3_ref, o_ref):
    # x_ref: [TB, 784] bf16, weights bf16, biases f32, output f32 [TB, 128].
    # Layer 1: [TB,784] @ [784,512] (f32 accum) + bias, ReLU in f32.
    h1 = jnp.dot(x_ref[...], w1_ref[...], preferred_element_type=jnp.float32)
    h1 = jnp.maximum(h1 + b1_ref[...], 0.0)
    # Layer 2: [TB,512] @ [512,512]
    h2 = jnp.dot(h1.astype(jnp.bfloat16), w2_ref[...],
                 preferred_element_type=jnp.float32)
    h2 = jnp.maximum(h2 + b2_ref[...], 0.0)
    # Layer 3: [TB,512] @ [512,128]  (zero-padded logits, no activation)
    logits = jnp.dot(h2.astype(jnp.bfloat16), w3_ref[...],
                     preferred_element_type=jnp.float32)
    o_ref[...] = (logits + b3_ref[...]).astype(o_ref.dtype)


def prepare_params(params):
    """Cast weights to bf16 and pad the last layer to 128 output lanes."""
    w1, b1, w2, b2, w3, b3 = params
    w3p = jnp.zeros((HID, OUT_PAD), jnp.float32).at[:, :OUT_DIM].set(w3)
    b3p = jnp.zeros((1, OUT_PAD), jnp.float32).at[:, :OUT_DIM].set(b3)
    return (w1.astype(jnp.bfloat16), b1.astype(jnp.float32),
            w2.astype(jnp.bfloat16), b2.astype(jnp.float32),
            w3p.astype(jnp.bfloat16), b3p.astype(jnp.float32))


@functools.partial(jax.jit, static_argnames=("tb",))
def _forward_prepared(x_nchw, prepared, tb):
    w1, b1, w2, b2, w3p, b3p = prepared
    B = x_nchw.shape[0]
    x_flat = x_nchw.reshape(B, IN_DIM).astype(jnp.bfloat16)  # nn.Flatten()

    b_pad = pl.cdiv(B, tb) * tb
    if b_pad != B:
        x_flat = jnp.pad(x_flat, ((0, b_pad - B), (0, 0)))
    grid = (b_pad // tb,)

    weight_bytes = (w1.size + w2.size + w3p.size) * 2 \
                 + (b1.size + b2.size + b3p.size) * 4
    cost = pl.CostEstimate(
        flops=2 * b_pad * (IN_DIM * HID + HID * HID + HID * OUT_PAD),
        transcendentals=0,
        bytes_accessed=weight_bytes + x_flat.size * 2 + b_pad * OUT_PAD * 4,
    )

    out = pl.pallas_call(
        mlp_kernel,
        out_shape=jax.ShapeDtypeStruct((b_pad, OUT_PAD), jnp.float32),
        grid_spec=pltpu.PrefetchScalarGridSpec(
            num_scalar_prefetch=0,
            grid=grid,
            in_specs=[
                pl.BlockSpec((tb, IN_DIM), lambda i: (i, 0)),     # x tile
                pl.BlockSpec((IN_DIM, HID), lambda i: (0, 0)),    # w1 (resident)
                pl.BlockSpec((1, HID), lambda i: (0, 0)),         # b1
                pl.BlockSpec((HID, HID), lambda i: (0, 0)),       # w2
                pl.BlockSpec((1, HID), lambda i: (0, 0)),         # b2
                pl.BlockSpec((HID, OUT_PAD), lambda i: (0, 0)),   # w3 (padded)
                pl.BlockSpec((1, OUT_PAD), lambda i: (0, 0)),     # b3 (padded)
            ],
            out_specs=pl.BlockSpec((tb, OUT_PAD), lambda i: (i, 0)),
        ),
        compiler_params=pltpu.CompilerParams(
            dimension_semantics=("parallel",),
        ),
        cost_estimate=cost,
    )(x_flat, w1, b1, w2, b2, w3p, b3p)

    return out[:B, :OUT_DIM]


def neural_network_forward(x_nchw, params):
    """x_nchw: [B, 1, 28, 28] float32. Returns logits [B, 10] float32."""
    B = x_nchw.shape[0]
    # 256-row batch tile when serving real batches (MXU-shaped M dim);
    # for tiny batches just round up to a multiple of 8 (sublane granularity).
    tb = 256 if B >= 256 else max(8, ((B + 7) // 8) * 8)
    prepared = prepare_params(params)
    return _forward_prepared(x_nchw, prepared, tb)


def init_params(key):
    """Deterministic init matching PyTorch nn.Linear shapes.

    PyTorch stores weights as [out, in]; we store the transpose [in, out] so
    the kernel does x @ W directly. Init mimics torch's U(-1/sqrt(in), 1/sqrt(in)).
    """
    dims = [(IN_DIM, HID), (HID, HID), (HID, OUT_DIM)]
    params = []
    for fan_in, fan_out in dims:
        kw, kb, key = jax.random.split(key, 3)
        bound = 1.0 / jnp.sqrt(jnp.float32(fan_in))
        w = jax.random.uniform(kw, (fan_in, fan_out), jnp.float32, -bound, bound)
        b = jax.random.uniform(kb, (1, fan_out), jnp.float32, -bound, bound)
        params += [w, b]
    return tuple(params)


if __name__ == "__main__":
    key = jax.random.PRNGKey(0)
    kx, kp = jax.random.split(key)

    # Small batch, FashionMNIST-style input [B, 1, 28, 28] (NCHW).
    B = 2
    x = jax.random.normal(kx, (B, 1, 28, 28), dtype=jnp.float32)
    params = init_params(kp)

    logits = neural_network_forward(x, params)
    logits = jax.block_until_ready(logits)
    assert logits.shape == (B, OUT_DIM)

    # Pure-JAX reference with the SAME bf16-weight / f32-accum math.
    w1, b1, w2, b2, w3, b3 = params
    xf = x.reshape(B, IN_DIM).astype(jnp.bfloat16)
    ref = jnp.dot(xf, w1.astype(jnp.bfloat16), preferred_element_type=jnp.float32)
    ref = jnp.maximum(ref + b1, 0.0)
    ref = jnp.dot(ref.astype(jnp.bfloat16), w2.astype(jnp.bfloat16),
                  preferred_element_type=jnp.float32)
    ref = jnp.maximum(ref + b2, 0.0)
    ref = jnp.dot(ref.astype(jnp.bfloat16), w3.astype(jnp.bfloat16),
                  preferred_element_type=jnp.float32) + b3
    assert jnp.allclose(logits, ref, atol=1e-2, rtol=1e-2), (
        float(jnp.max(jnp.abs(logits - ref))))

    print("KERNEL_OK")
</pallas_src>

<mosaic_0001>
module attributes {stable_mosaic.version = 11 : i64} {
  func.func @mlp_kernel(%arg0: i32, %arg1: memref<8x784xbf16, #tpu.memory_space<vmem>>, %arg2: memref<784x512xbf16, #tpu.memory_space<vmem>>, %arg3: memref<1x512xf32, #tpu.memory_space<vmem>>, %arg4: memref<512x512xbf16, #tpu.memory_space<vmem>>, %arg5: memref<1x512xf32, #tpu.memory_space<vmem>>, %arg6: memref<512x128xbf16, #tpu.memory_space<vmem>>, %arg7: memref<1x128xf32, #tpu.memory_space<vmem>>, %arg8: memref<8x128xf32, #tpu.memory_space<vmem>>) attributes {dimension_semantics = [#tpu.dimension_semantics<parallel>], iteration_bounds = array<i64: 1>, scalar_prefetch = 0 : i64, scratch_operands = 0 : i64, tpu.core_type = #tpu.core_type<tc>, window_params = [{transform_indices = @transform_0, window_bounds = array<i64: 8, 784>}, {pipeline_mode = #tpu.pipeline_mode<synchronous>, transform_indices = @transform_1, window_bounds = array<i64: 784, 512>}, {pipeline_mode = #tpu.pipeline_mode<synchronous>, transform_indices = @transform_2, window_bounds = array<i64: 1, 512>}, {pipeline_mode = #tpu.pipeline_mode<synchronous>, transform_indices = @transform_3, window_bounds = array<i64: 512, 512>}, {pipeline_mode = #tpu.pipeline_mode<synchronous>, transform_indices = @transform_4, window_bounds = array<i64: 1, 512>}, {pipeline_mode = #tpu.pipeline_mode<synchronous>, transform_indices = @transform_5, window_bounds = array<i64: 512, 128>}, {pipeline_mode = #tpu.pipeline_mode<synchronous>, transform_indices = @transform_6, window_bounds = array<i64: 1, 128>}, {transform_indices = @transform_7, window_bounds = array<i64: 8, 128>}]} {
    %c0 = arith.constant 0 : index
    %c0_0 = arith.constant 0 : index
    %0 = vector.load %arg1[%c0, %c0_0] : memref<8x784xbf16, #tpu.memory_space<vmem>>, vector<8x784xbf16>
    %c0_1 = arith.constant 0 : index
    %c0_2 = arith.constant 0 : index
    %1 = vector.load %arg2[%c0_1, %c0_2] : memref<784x512xbf16, #tpu.memory_space<vmem>>, vector<784x512xbf16>
    %cst = arith.constant dense<0.000000e+00> : vector<8x512xf32>
    %2 = tpu.matmul %0, %1, %cst {dimension_numbers = #tpu.dot_dimension_numbers<[1], [0], [0], [1], [0, 0, 1, 1], [], []>} : vector<8x784xbf16>, vector<784x512xbf16>, vector<8x512xf32> -> vector<8x512xf32>
    %c0_3 = arith.constant 0 : index
    %c0_4 = arith.constant 0 : index
    %3 = vector.load %arg3[%c0_3, %c0_4] : memref<1x512xf32, #tpu.memory_space<vmem>>, vector<1x512xf32>
    %4 = vector.broadcast %3 : vector<1x512xf32> to vector<8x512xf32>
    %5 = arith.addf %2, %4 : vector<8x512xf32>
    %cst_5 = arith.constant 0.000000e+00 : f32
    %6 = vector.broadcast %cst_5 : f32 to vector<8x512xf32>
    %7 = arith.maximumf %5, %6 : vector<8x512xf32>
    %8 = arith.truncf %7 : vector<8x512xf32> to vector<8x512xbf16>
    %c0_6 = arith.constant 0 : index
    %c0_7 = arith.constant 0 : index
    %9 = vector.load %arg4[%c0_6, %c0_7] : memref<512x512xbf16, #tpu.memory_space<vmem>>, vector<512x512xbf16>
    %cst_8 = arith.constant dense<0.000000e+00> : vector<8x512xf32>
    %10 = tpu.matmul %8, %9, %cst_8 {dimension_numbers = #tpu.dot_dimension_numbers<[1], [0], [0], [1], [0, 0, 1, 1], [], []>} : vector<8x512xbf16>, vector<512x512xbf16>, vector<8x512xf32> -> vector<8x512xf32>
    %c0_9 = arith.constant 0 : index
    %c0_10 = arith.constant 0 : index
    %11 = vector.load %arg5[%c0_9, %c0_10] : memref<1x512xf32, #tpu.memory_space<vmem>>, vector<1x512xf32>
    %12 = vector.broadcast %11 : vector<1x512xf32> to vector<8x512xf32>
    %13 = arith.addf %10, %12 : vector<8x512xf32>
    %cst_11 = arith.constant 0.000000e+00 : f32
    %14 = vector.broadcast %cst_11 : f32 to vector<8x512xf32>
    %15 = arith.maximumf %13, %14 : vector<8x512xf32>
    %16 = arith.truncf %15 : vector<8x512xf32> to vector<8x512xbf16>
    %c0_12 = arith.constant 0 : index
    %c0_13 = arith.constant 0 : index
    %17 = vector.load %arg6[%c0_12, %c0_13] : memref<512x128xbf16, #tpu.memory_space<vmem>>, vector<512x128xbf16>
    %cst_14 = arith.constant dense<0.000000e+00> : vector<8x128xf32>
    %18 = tpu.matmul %16, %17, %cst_14 {dimension_numbers = #tpu.dot_dimension_numbers<[1], [0], [0], [1], [0, 0, 1, 1], [], []>} : vector<8x512xbf16>, vector<512x128xbf16>, vector<8x128xf32> -> vector<8x128xf32>
    %c0_15 = arith.constant 0 : index
    %c0_16 = arith.constant 0 : index
    %19 = vector.load %arg7[%c0_15, %c0_16] : memref<1x128xf32, #tpu.memory_space<vmem>>, vector<1x128xf32>
    %20 = vector.broadcast %19 : vector<1x128xf32> to vector<8x128xf32>
    %21 = arith.addf %18, %20 : vector<8x128xf32>
    %c0_17 = arith.constant 0 : index
    %c0_18 = arith.constant 0 : index
    %22 = vector.load %arg8[%c0_17, %c0_18] : memref<8x128xf32, #tpu.memory_space<vmem>>, vector<8x128xf32>
    tpu.vector_store %arg8[%c0_17, %c0_18], %21 {strides = array<i32>} : memref<8x128xf32, #tpu.memory_space<vmem>>, vector<8x128xf32>,
    return
  }
  func.func @transform_0(%arg0: i32) -> (i32, i32) {
    %c0_i32 = arith.constant 0 : i32
    %c0_i32_0 = arith.constant 0 : i32
    return %arg0, %c0_i32 : i32, i32
  }
  func.func @transform_1(%arg0: i32) -> (i32, i32) {
    %c0_i32 = arith.constant 0 : i32
    %c0_i32_0 = arith.constant 0 : i32
    %c0_i32_1 = arith.constant 0 : i32
    return %c0_i32, %c0_i32_0 : i32, i32
  }
  func.func @transform_2(%arg0: i32) -> (i32, i32) {
    %c0_i32 = arith.constant 0 : i32
    %c0_i32_0 = arith.constant 0 : i32
    %c0_i32_1 = arith.constant 0 : i32
    return %c0_i32, %c0_i32_0 : i32, i32
  }
  func.func @transform_3(%arg0: i32) -> (i32, i32) {
    %c0_i32 = arith.constant 0 : i32
    %c0_i32_0 = arith.constant 0 : i32
    %c0_i32_1 = arith.constant 0 : i32
    return %c0_i32, %c0_i32_0 : i32, i32
  }
  func.func @transform_4(%arg0: i32) -> (i32, i32) {
    %c0_i32 = arith.constant 0 : i32
    %c0_i32_0 = arith.constant 0 : i32
    %c0_i32_1 = arith.constant 0 : i32
    return %c0_i32, %c0_i32_0 : i32, i32
  }
  func.func @transform_5(%arg0: i32) -> (i32, i32) {
    %c0_i32 = arith.constant 0 : i32
    %c0_i32_0 = arith.constant 0 : i32
    %c0_i32_1 = arith.constant 0 : i32
    return %c0_i32, %c0_i32_0 : i32, i32
  }
  func.func @transform_6(%arg0: i32) -> (i32, i32) {
    %c0_i32 = arith.constant 0 : i32
    %c0_i32_0 = arith.constant 0 : i32
    %c0_i32_1 = arith.constant 0 : i32
    return %c0_i32, %c0_i32_0 : i32, i32
  }
  func.func @transform_7(%arg0: i32) -> (i32, i32) {
    %c0_i32 = arith.constant 0 : i32
    %c0_i32_0 = arith.constant 0 : i32
    return %arg0, %c0_i32 : i32, i32
  }
}

</mosaic_0001>

<bundles_post_ra>
// kernel: _forward_prepared.1
= control target key start
LH: loop header
LB: loop body
LE: loop exit
PB: predicated region body
PF: predicated region fallthrough
CT: control target
= control target key end

     0   :  { %12 = vsyncpa [#allocation3], 0  ;;  %s4157_s0 = inlined_call_operand.vmem [shape: bf16[8,784], index: 0, kind: input, shape index: {}]   ;;  %s4158_s1 = inlined_call_operand.hbm [shape: bf16[784,512], index: 1, kind: input, shape index: {}]   ;;  %s4159_s2 = inlined_call_operand.vmem [shape: f32[1,512], index: 2, kind: input, shape index: {}]   ;;  %s4160_s3 = inlined_call_operand.hbm [shape: bf16[512,512], index: 3, kind: input, shape index: {}]   ;;  %s4161_s4 = inlined_call_operand.vmem [shape: f32[1,512], index: 4, kind: input, shape index: {}]   ;;  %s4162_s5 = inlined_call_operand.hbm [shape: bf16[512,128], index: 5, kind: input, shape index: {}]   ;;  %s4163_s6 = inlined_call_operand.vmem [shape: f32[1,128], index: 6, kind: input, shape index: {}]   ;;  %s4164_s7 = inlined_call_operand.vmem [shape: f32[8,128], index: 7, kind: output, shape index: {}]  }
   0x1   :  { %13 = vsyncpa [#allocation5], 0  ;;  %s3999_s24 = smov [#allocation4]   ;;  %s4000_s26 = smov [#allocation2]  }
   0x2   :  { %s35_s25 = sshll.u32 %s3999_s24, 4  ;;  %s21_s27 = sshll.u32 %s4000_s26, 4  ;;  %s36_s25 = int_to_ptr.vmem [resolvable:$true] %s35_s25  ;;  %s4047_s27 = int_to_ptr.vmem [resolvable:$true] %s21_s27 }
   0x3   :  { %s3929_s30 = scalar_lea.hbm %s4160_s3, 16384 }
   0x4   :  { %p3930_p0 = scmp.ne.s32.totalorder %s4160_s3, %s3929_s30  ;;  %p3933_p1 = scmp.lt.u32.totalorder %s3929_s30, %s4160_s3 }
   0x6   :  { %p3935_p2 = pnand %p3933_p1, %p3930_p0 }
   0x8   :  { %3938 = shalt.err (!%p3935_p2)
}
   0x9   :  { %s3939_s12 = scalar_lea.vmem %s36_s25, 16384  ;;  %p3944_p4 = scmp.lt.s32.totalorder %s36_s25, %s36_s25 }
   0xa   :  { %p3940_p3 = scmp.ne.s32.totalorder %s36_s25, %s3939_s12  ;;  %p3945_p5 = scmp.lt.s32.totalorder %s3939_s12, %s3939_s12 }
   0xc   :  { %p3946_p6 = por %p3945_p5, %p3944_p4 }
   0xe   :  { %p3947_p7 = pnand %p3946_p6, %p3940_p3 }
  0x10   :  { %3950 = shalt.err (!%p3947_p7)
}
  0x11   :  { %s4001_s13 = smov 256   ;;  %s4002_s14 = smov 16  }
  0x12   :  { %41 = dma.hbm_to_vmem [thread:$0]  %s4160_s3, 16384, %s36_s25, [#allocation5], %s4001_s13, %s4001_s13, %s4002_s14  }
  0x13   :  { %s3951_s19 = scalar_lea.hbm %s4158_s1, 25088 }
  0x14   :  { %p3952_p8 = scmp.ne.s32.totalorder %s4158_s1, %s3951_s19  ;;  %p3955_p9 = scmp.lt.u32.totalorder %s3951_s19, %s4158_s1 }
  0x16   :  { %p3957_p10 = pnand %p3955_p9, %p3952_p8 }
  0x18   :  { %3960 = shalt.err (!%p3957_p10)
}
  0x19   :  { %s3961_s24 = scalar_lea.vmem %s4047_s27, 25088  ;;  %p3966_p12 = scmp.lt.s32.totalorder %s4047_s27, %s4047_s27 }
  0x1a   :  { %p3962_p11 = scmp.ne.s32.totalorder %s4047_s27, %s3961_s24  ;;  %p3967_p13 = scmp.lt.s32.totalorder %s3961_s24, %s3961_s24 }
  0x1c   :  { %p3968_p0 = por %p3967_p13, %p3966_p12 }
  0x1e   :  { %p3969_p1 = pnand %p3968_p0, %p3962_p11 }
  0x20   :  { %3972 = shalt.err (!%p3969_p1)
}
  0x21   :  { %27 = dma.hbm_to_vmem [thread:$0]  %s4158_s1, 25088, %s4047_s27, [#allocation3], %s4001_s13, %s4001_s13, %s4002_s14  }
  0x22   :  { %s4003_s26 = smov [#allocation6]   ;;  %s3973_s8 = scalar_lea.hbm %s4162_s5, 4096 }
  0x23   :  { %s49_s28 = sshll.u32 %s4003_s26, 4  ;;  %p3974_p2 = scmp.ne.s32.totalorder %s4162_s5, %s3973_s8  ;;  %s50_s28 = int_to_ptr.vmem [resolvable:$true] %s49_s28 }
  0x24   :  { %p3977_p3 = scmp.lt.u32.totalorder %s3973_s8, %s4162_s5 }
  0x26   :  { %p3979_p4 = pnand %p3977_p3, %p3974_p2 }
  0x28   :  { %3982 = shalt.err (!%p3979_p4)
}
  0x29   :  { %s3983_s15 = scalar_lea.vmem %s50_s28, 4096  ;;  %p3988_p6 = scmp.lt.s32.totalorder %s50_s28, %s50_s28 }
  0x2a   :  { %p3984_p5 = scmp.ne.s32.totalorder %s50_s28, %s3983_s15  ;;  %p3989_p7 = scmp.lt.s32.totalorder %s3983_s15, %s3983_s15 }
  0x2c   :  { %p3990_p8 = por %p3989_p7, %p3988_p6 }
  0x2e   :  { %p3991_p9 = pnand %p3990_p8, %p3984_p5 }
  0x30   :  { %3994 = shalt.err (!%p3991_p9)
}
  0x31   :  { %s4004_s1 = smov 64   ;;  %s4005_s27 = smov 4  }
  0x32   :  { %55 = dma.hbm_to_vmem [thread:$0]  %s4162_s5, 4096, %s50_s28, [#allocation5], %s4004_s1, %s4004_s1, %s4005_s27  }
  0x33   :  { %3995 = dma.done.wait [#allocation3], 25088  }
  0x34   :  { %3996 = vsyncadd [#allocation3], 4294942208 }
  0x35   :  { %3997 = dma.done.wait [#allocation5], 20480  }
  0x36   :  { %3998 = vsyncadd [#allocation5], 4294946816  ;;  %v3404_v0 = vld [vmem:[#allocation2 + $0x4] ss:$16 sps:$4 sm:$0xff]   ;;  %v3406_v1 = vld [vmem:[#allocation2 + $0xc] ss:$16 sps:$4 sm:$0xff]  }
  0x37   :  { %1298 = vmatprep.subr.bf16.mxu0 %v3404_v0  ;;  %v3408_v2 = vld [vmem:[#allocation2] ss:$16 sps:$4 sm:$0xff]   ;;  %v3409_v3 = vld [vmem:[#allocation2 + $0x8] ss:$16 sps:$4 sm:$0xff]   ;;  %1462 = vmatprep.subr.bf16.mxu1 %v3406_v1  ;;  %v3410_v4 = vld [vmem:[#allocation2 + $0x24] ss:$16 sps:$4 sm:$0xff]  }
  0x38   :  { %1299 = vmatpush1.bf16.msra.mxu0 %v3408_v2  ;;  %1463 = vmatpush1.bf16.msra.mxu1 %v3409_v3  ;;  %v3412_v5 = vld [vmem:[#allocation2 + $0x2c] ss:$16 sps:$4 sm:$0xff]   ;;  %v3414_v6 = vld [vmem:[#allocation2 + $0x20] ss:$16 sps:$4 sm:$0xff]   ;;  %v3415_v7 = vld [vmem:[#allocation2 + $0x28] ss:$16 sps:$4 sm:$0xff]  }
  0x39   :  { %1300 = vmatprep.subr.bf16.mxu0 %v3410_v4  ;;  %1464 = vmatprep.subr.bf16.mxu1 %v3412_v5  ;;  %v3416_v8 = vld [vmem:[#allocation2 + $0x44] ss:$16 sps:$4 sm:$0xff]   ;;  %v3418_v9 = vld [vmem:[#allocation2 + $0x4c] ss:$16 sps:$4 sm:$0xff]   ;;  %v3420_v10 = vld [vmem:[#allocation2 + $0x40] ss:$16 sps:$4 sm:$0xff]  }
  0x3a   :  { %v3421_v11 = vld [vmem:[#allocation2 + $0x48] ss:$16 sps:$4 sm:$0xff]   ;;  %v3422_v12 = vld [vmem:[#allocation2 + $0x64] ss:$16 sps:$4 sm:$0xff]   ;;  %v3424_v13 = vld [vmem:[#allocation2 + $0x6c] ss:$16 sps:$4 sm:$0xff]  }
  0x3b   :  { %v3426_v14 = vld [vmem:[#allocation2 + $0x60] ss:$16 sps:$4 sm:$0xff]   ;;  %v3427_v15 = vld [vmem:[#allocation2 + $0x68] ss:$16 sps:$4 sm:$0xff]   ;;  %v3428_v16 = vld [vmem:[#allocation2 + $0x84] ss:$16 sps:$4 sm:$0xff]  }
  0x3c   :  { %1301 = vmatpush1.bf16.msra.mxu0 %v3414_v6  ;;  %1465 = vmatpush1.bf16.msra.mxu1 %v3415_v7  ;;  %v3430_v17 = vld [vmem:[#allocation2 + $0x8c] ss:$16 sps:$4 sm:$0xff]   ;;  %v3432_v18 = vld [vmem:[#allocation2 + $0x80] ss:$16 sps:$4 sm:$0xff]   ;;  %v3433_v19 = vld [vmem:[#allocation2 + $0x88] ss:$16 sps:$4 sm:$0xff]  }
  0x3d   :  { %1302 = vmatprep.subr.bf16.mxu0 %v3416_v8  ;;  %1466 = vmatprep.subr.bf16.mxu1 %v3418_v9  ;;  %v3434_v20 = vld [vmem:[#allocation2 + $0xa4] ss:$16 sps:$4 sm:$0xff]   ;;  %v3436_v21 = vld [vmem:[#allocation2 + $0xac] ss:$16 sps:$4 sm:$0xff]   ;;  %v3438_v22 = vld [vmem:[#allocation2 + $0xa0] ss:$16 sps:$4 sm:$0xff]  }
  0x3e   :  { %v3439_v23 = vld [vmem:[#allocation2 + $0xa8] ss:$16 sps:$4 sm:$0xff]   ;;  %v3440_v24 = vld [vmem:[#allocation2 + $0xc4] ss:$16 sps:$4 sm:$0xff]   ;;  %v3442_v25 = vld [vmem:[#allocation2 + $0xcc] ss:$16 sps:$4 sm:$0xff]  }
  0x3f   :  { %v3444_v26 = vld [vmem:[#allocation2 + $0xc0] ss:$16 sps:$4 sm:$0xff]   ;;  %v3445_v27 = vld [vmem:[#allocation2 + $0xc8] ss:$16 sps:$4 sm:$0xff]   ;;  %v3446_v28 = vld [vmem:[#allocation2 + $0xe4] ss:$16 sps:$4 sm:$0xff]  }
  0x40   :  { %1303 = vmatpush1.bf16.msra.mxu0 %v3420_v10  ;;  %1467 = vmatpush1.bf16.msra.mxu1 %v3421_v11  ;;  %v3448_v29 = vld [vmem:[#allocation2 + $0xec] ss:$16 sps:$4 sm:$0xff]   ;;  %v3450_v30 = vld [vmem:[#allocation2 + $0xe0] ss:$16 sps:$4 sm:$0xff]   ;;  %v3451_v31 = vld [vmem:[#allocation2 + $0xe8] ss:$16 sps:$4 sm:$0xff]  }
  0x41   :  { %1304 = vmatprep.subr.bf16.mxu0 %v3422_v12  ;;  %1468 = vmatprep.subr.bf16.mxu1 %v3424_v13  ;;  %v3452_v32 = vld [vmem:[#allocation2 + $0x104] ss:$16 sps:$4 sm:$0xff]   ;;  %v3454_v33 = vld [vmem:[#allocation2 + $0x10c] ss:$16 sps:$4 sm:$0xff]   ;;  %v3456_v34 = vld [vmem:[#allocation2 + $0x100] ss:$16 sps:$4 sm:$0xff]  }
  0x42   :  { %v3457_v35 = vld [vmem:[#allocation2 + $0x108] ss:$16 sps:$4 sm:$0xff]   ;;  %v3458_v36 = vld [vmem:[#allocation2 + $0x124] ss:$16 sps:$4 sm:$0xff]   ;;  %v3460_v37 = vld [vmem:[#allocation2 + $0x12c] ss:$16 sps:$4 sm:$0xff]  }
  0x43   :  { %v3462_v38 = vld [vmem:[#allocation2 + $0x120] ss:$16 sps:$4 sm:$0xff]   ;;  %v3463_v39 = vld [vmem:[#allocation2 + $0x128] ss:$16 sps:$4 sm:$0xff]   ;;  %v3464_v40 = vld [vmem:[#allocation2 + $0x144] ss:$16 sps:$4 sm:$0xff]  }
  0x44   :  { %1305 = vmatpush1.bf16.msra.mxu0 %v3426_v14  ;;  %1469 = vmatpush1.bf16.msra.mxu1 %v3427_v15  ;;  %v3466_v41 = vld [vmem:[#allocation2 + $0x14c] ss:$16 sps:$4 sm:$0xff]   ;;  %v3468_v42 = vld [vmem:[#allocation2 + $0x140] ss:$16 sps:$4 sm:$0xff]   ;;  %v3469_v43 = vld [vmem:[#allocation2 + $0x148] ss:$16 sps:$4 sm:$0xff]  }
  0x45   :  { %1306 = vmatprep.subr.bf16.mxu0 %v3428_v16  ;;  %1470 = vmatprep.subr.bf16.mxu1 %v3430_v17  ;;  %v3470_v44 = vld [vmem:[#allocation2 + $0x164] ss:$16 sps:$4 sm:$0xff]   ;;  %v3472_v45 = vld [vmem:[#allocation2 + $0x16c] ss:$16 sps:$4 sm:$0xff]   ;;  %v3474_v47 = vld [vmem:[#allocation2 + $0x160] ss:$16 sps:$4 sm:$0xff]  }
  0x46   :  { %v68_v46 = vld [vmem:[%s4157_s0] sm:$0xff]  ;;  %v3475_v49 = vld [vmem:[#allocation2 + $0x168] ss:$16 sps:$4 sm:$0xff]   ;;  %v3478_v51 = vld [vmem:[#allocation2 + $0x18c] ss:$16 sps:$4 sm:$0xff]   ;;  %vm1294_vm0 = vcmask 130048  }
  0x47   :  { %v2947_v48 = vcombine.high %v68_v46, %v68_v46  ;;  %v3476_v50 = vld [vmem:[#allocation2 + $0x184] ss:$16 sps:$4 sm:$0xff]   ;;  %v3480_v52 = vld [vmem:[#allocation2 + $0x180] ss:$16 sps:$4 sm:$0xff]   ;;  %v3481_v53 = vld [vmem:[#allocation2 + $0x188] ss:$16 sps:$4 sm:$0xff]   ;;  %v2946_v4 = vcombine.low %v68_v46, %v68_v46 }
  0x48   :  { %1307 = vmatpush1.bf16.msra.mxu0 %v3432_v18  ;;  %1471 = vmatpush1.bf16.msra.mxu1 %v3433_v19  ;;  %v3482_v54 = vld [vmem:[#allocation2 + $0x1a4] ss:$16 sps:$4 sm:$0xff]   ;;  %v3484_v55 = vld [vmem:[#allocation2 + $0x1ac] ss:$16 sps:$4 sm:$0xff]   ;;  %v3486_v56 = vld [vmem:[#allocation2 + $0x1a0] ss:$16 sps:$4 sm:$0xff]  }
  0x49   :  { %1308 = vmatprep.subr.bf16.mxu0 %v3434_v20  ;;  %1472 = vmatprep.subr.bf16.mxu1 %v3436_v21  ;;  %v3487_v57 = vld [vmem:[#allocation2 + $0x1a8] ss:$16 sps:$4 sm:$0xff]   ;;  %v3488_v58 = vld [vmem:[#allocation2 + $0x1c4] ss:$16 sps:$4 sm:$0xff]   ;;  %v3490_v59 = vld [vmem:[#allocation2 + $0x1cc] ss:$16 sps:$4 sm:$0xff]  }
  0x4a   :  { %1330 = vmatprep.mubr.bf16.mxu0 %v2947_v48  ;;  %1494 = vmatprep.mubr.bf16.mxu1 %v2947_v48  ;;  %v3492_v60 = vld [vmem:[#allocation2 + $0x1c0] ss:$16 sps:$4 sm:$0xff]   ;;  %v3493_v61 = vld [vmem:[#allocation2 + $0x1c8] ss:$16 sps:$4 sm:$0xff]   ;;  %v3494_v62 = vld [vmem:[#allocation2 + $0x1e4] ss:$16 sps:$4 sm:$0xff]  }
  0x4b   :  { %v3496_v63 = vld [vmem:[#allocation2 + $0x1ec] ss:$16 sps:$4 sm:$0xff]   ;;  %v3498_v0 = vld [vmem:[#allocation2 + $0x1e0] ss:$16 sps:$4 sm:$0xff]   ;;  %v3499_v1 = vld [vmem:[#allocation2 + $0x1e8] ss:$16 sps:$4 sm:$0xff]  }
  0x4c   :  { %1309 = vmatpush1.bf16.msra.mxu0 %v3438_v22  ;;  %1473 = vmatpush1.bf16.msra.mxu1 %v3439_v23  ;;  %v3504_v2 = vld [vmem:[#allocation2 + $0x204] ss:$16 sps:$4 sm:$0xff]   ;;  %v3507_v3 = vld [vmem:[#allocation2 + $0x20c] ss:$16 sps:$4 sm:$0xff]   ;;  %v3502_v5 = vld [vmem:[#allocation2 + $0x200] ss:$16 sps:$4 sm:$0xff]  }
  0x4d   :  { %1310 = vmatprep.subr.bf16.mxu0 %v3440_v24  ;;  %1474 = vmatprep.subr.bf16.mxu1 %v3442_v25  ;;  %v3505_v6 = vld [vmem:[#allocation2 + $0x208] ss:$16 sps:$4 sm:$0xff]   ;;  %v3510_v7 = vld [vmem:[#allocation2 + $0x224] ss:$16 sps:$4 sm:$0xff]   ;;  %v3513_v8 = vld [vmem:[#allocation2 + $0x22c] ss:$16 sps:$4 sm:$0xff]  }
  0x4e   :  { %v3508_v9 = vld [vmem:[#allocation2 + $0x220] ss:$16 sps:$4 sm:$0xff]   ;;  %v3511_v10 = vld [vmem:[#allocation2 + $0x228] ss:$16 sps:$4 sm:$0xff]   ;;  %v3516_v11 = vld [vmem:[#allocation2 + $0x244] ss:$16 sps:$4 sm:$0xff]  }
  0x4f   :  { %v3519_v12 = vld [vmem:[#allocation2 + $0x24c] ss:$16 sps:$4 sm:$0xff]   ;;  %v3514_v13 = vld [vmem:[#allocation2 + $0x240] ss:$16 sps:$4 sm:$0xff]   ;;  %v3517_v14 = vld [vmem:[#allocation2 + $0x248] ss:$16 sps:$4 sm:$0xff]  }
  0x50   :  { %1311 = vmatpush1.bf16.msra.mxu0 %v3444_v26  ;;  %1475 = vmatpush1.bf16.msra.mxu1 %v3445_v27  ;;  %v3522_v15 = vld [vmem:[#allocation2 + $0x264] ss:$16 sps:$4 sm:$0xff]   ;;  %v3525_v16 = vld [vmem:[#allocation2 + $0x26c] ss:$16 sps:$4 sm:$0xff]   ;;  %v3520_v17 = vld [vmem:[#allocation2 + $0x260] ss:$16 sps:$4 sm:$0xff]  }
  0x51   :  { %1312 = vmatprep.subr.bf16.mxu0 %v3446_v28  ;;  %1476 = vmatprep.subr.bf16.mxu1 %v3448_v29  ;;  %v3523_v18 = vld [vmem:[#allocation2 + $0x268] ss:$16 sps:$4 sm:$0xff]   ;;  %v3528_v19 = vld [vmem:[#allocation2 + $0x284] ss:$16 sps:$4 sm:$0xff]   ;;  %v3531_v20 = vld [vmem:[#allocation2 + $0x28c] ss:$16 sps:$4 sm:$0xff]  }
  0x52   :  { %v3526_v21 = vld [vmem:[#allocation2 + $0x280] ss:$16 sps:$4 sm:$0xff]   ;;  %v3529_v22 = vld [vmem:[#allocation2 + $0x288] ss:$16 sps:$4 sm:$0xff]   ;;  %v3534_v23 = vld [vmem:[#allocation2 + $0x2a4] ss:$16 sps:$4 sm:$0xff]  }
  0x53   :  { %v3537_v24 = vld [vmem:[#allocation2 + $0x2ac] ss:$16 sps:$4 sm:$0xff]   ;;  %v3532_v25 = vld [vmem:[#allocation2 + $0x2a0] ss:$16 sps:$4 sm:$0xff]   ;;  %v3535_v26 = vld [vmem:[#allocation2 + $0x2a8] ss:$16 sps:$4 sm:$0xff]  }
  0x54   :  { %1313 = vmatpush1.bf16.msra.mxu0 %v3450_v30  ;;  %1477 = vmatpush1.bf16.msra.mxu1 %v3451_v31  ;;  %v3540_v27 = vld [vmem:[#allocation2 + $0x2c4] ss:$16 sps:$4 sm:$0xff]   ;;  %v3543_v28 = vld [vmem:[#allocation2 + $0x2cc] ss:$16 sps:$4 sm:$0xff]   ;;  %v3538_v31 = vld [vmem:[#allocation2 + $0x2c0] ss:$16 sps:$4 sm:$0xff]  }
  0x55   :  { %1314 = vmatprep.subr.bf16.mxu0 %v3452_v32  ;;  %1478 = vmatprep.subr.bf16.mxu1 %v3454_v33  ;;  %v4096_v29 = vld [vmem:[%s4157_s0 + $0x8] sm:$0xff]  ;;  %v3546_v33 = vld [vmem:[#allocation2 + $0x2e4] ss:$16 sps:$4 sm:$0xff]  }
  0x56   :  { %v2949_v30 = vcombine.high %v4096_v29, %v4096_v29  ;;  %v3541_v32 = vld [vmem:[#allocation2 + $0x2c8] ss:$16 sps:$4 sm:$0xff]   ;;  %v3567_v46 = vld [vmem:[#allocation2 + $0x34c] ss:$16 sps:$4 sm:$0xff]  }
  0x57   :  { %v3565_v48 = vld [vmem:[#allocation2 + $0x348] ss:$16 sps:$4 sm:$0xff]  }
  0x58   :  { %1315 = vmatpush1.bf16.msra.mxu0 %v3456_v34  ;;  %1479 = vmatpush1.bf16.msra.mxu1 %v3457_v35  ;;  %v3549_v34 = vld [vmem:[#allocation2 + $0x2ec] ss:$16 sps:$4 sm:$0xff]   ;;  %v3544_v35 = vld [vmem:[#allocation2 + $0x2e0] ss:$16 sps:$4 sm:$0xff]  }
  0x59   :  { %1316 = vmatprep.subr.bf16.mxu0 %v3458_v36  ;;  %1480 = vmatprep.subr.bf16.mxu1 %v3460_v37  ;;  %v3547_v36 = vld [vmem:[#allocation2 + $0x2e8] ss:$16 sps:$4 sm:$0xff]   ;;  %v3552_v37 = vld [vmem:[#allocation2 + $0x304] ss:$16 sps:$4 sm:$0xff]  }
  0x5c   :  { %1317 = vmatpush1.bf16.msra.mxu0 %v3462_v38  ;;  %1481 = vmatpush1.bf16.msra.mxu1 %v3463_v39  ;;  %v3555_v38 = vld [vmem:[#allocation2 + $0x30c] ss:$16 sps:$4 sm:$0xff]   ;;  %v3550_v39 = vld [vmem:[#allocation2 + $0x300] ss:$16 sps:$4 sm:$0xff]  }
  0x5d   :  { %1318 = vmatprep.subr.bf16.mxu0 %v3464_v40  ;;  %1482 = vmatprep.subr.bf16.mxu1 %v3466_v41  ;;  %v3553_v40 = vld [vmem:[#allocation2 + $0x308] ss:$16 sps:$4 sm:$0xff]   ;;  %v3558_v41 = vld [vmem:[#allocation2 + $0x324] ss:$16 sps:$4 sm:$0xff]  }
  0x60   :  { %1319 = vmatpush1.bf16.msra.mxu0 %v3468_v42  ;;  %1483 = vmatpush1.bf16.msra.mxu1 %v3469_v43  ;;  %v3561_v42 = vld [vmem:[#allocation2 + $0x32c] ss:$16 sps:$4 sm:$0xff]   ;;  %v3556_v43 = vld [vmem:[#allocation2 + $0x320] ss:$16 sps:$4 sm:$0xff]  }
  0x61   :  { %1320 = vmatprep.subr.bf16.mxu0 %v3470_v44  ;;  %1484 = vmatprep.subr.bf16.mxu1 %v3472_v45  ;;  %v3559_v44 = vld [vmem:[#allocation2 + $0x328] ss:$16 sps:$4 sm:$0xff]   ;;  %v3564_v45 = vld [vmem:[#allocation2 + $0x344] ss:$16 sps:$4 sm:$0xff]  }
  0x64   :  { %1321 = vmatpush1.bf16.msra.mxu0 %v3474_v47  ;;  %1485 = vmatpush1.bf16.msra.mxu1 %v3475_v49  ;;  %v3562_v47 = vld [vmem:[#allocation2 + $0x340] ss:$16 sps:$4 sm:$0xff]   ;;  %v3570_v49 = vld [vmem:[#allocation2 + $0x364] ss:$16 sps:$4 sm:$0xff]  }
  0x65   :  { %1322 = vmatprep.subr.bf16.mxu0 %v3476_v50  ;;  %1486 = vmatprep.subr.bf16.mxu1 %v3478_v51  ;;  %v3573_v50 = vld [vmem:[#allocation2 + $0x36c] ss:$16 sps:$4 sm:$0xff]   ;;  %v3568_v51 = vld [vmem:[#allocation2 + $0x360] ss:$16 sps:$4 sm:$0xff]  }
  0x68   :  { %1323 = vmatpush1.bf16.msra.mxu0 %v3480_v52  ;;  %1487 = vmatpush1.bf16.msra.mxu1 %v3481_v53  ;;  %v3571_v52 = vld [vmem:[#allocation2 + $0x368] ss:$16 sps:$4 sm:$0xff]   ;;  %v3576_v53 = vld [vmem:[#allocation2 + $0x384] ss:$16 sps:$4 sm:$0xff]  }
  0x69   :  { %1324 = vmatprep.subr.bf16.mxu0 %v3482_v54  ;;  %1488 = vmatprep.subr.bf16.mxu1 %v3484_v55  ;;  %v3579_v54 = vld [vmem:[#allocation2 + $0x38c] ss:$16 sps:$4 sm:$0xff]   ;;  %v3574_v55 = vld [vmem:[#allocation2 + $0x380] ss:$16 sps:$4 sm:$0xff]  }
  0x6c   :  { %1325 = vmatpush1.bf16.msra.mxu0 %v3486_v56  ;;  %1489 = vmatpush1.bf16.msra.mxu1 %v3487_v57  ;;  %v3577_v56 = vld [vmem:[#allocation2 + $0x388] ss:$16 sps:$4 sm:$0xff]   ;;  %v3582_v57 = vld [vmem:[#allocation2 + $0x3a4] ss:$16 sps:$4 sm:$0xff]  }
  0x6d   :  { %1326 = vmatprep.subr.bf16.mxu0 %v3488_v58  ;;  %1490 = vmatprep.subr.bf16.mxu1 %v3490_v59  ;;  %v3585_v58 = vld [vmem:[#allocation2 + $0x3ac] ss:$16 sps:$4 sm:$0xff]   ;;  %v3580_v59 = vld [vmem:[#allocation2 + $0x3a0] ss:$16 sps:$4 sm:$0xff]  }
  0x70   :  { %1327 = vmatpush1.bf16.msra.mxu0 %v3492_v60  ;;  %1491 = vmatpush1.bf16.msra.mxu1 %v3493_v61  ;;  %v3583_v60 = vld [vmem:[#allocation2 + $0x3a8] ss:$16 sps:$4 sm:$0xff]   ;;  %v3588_v61 = vld [vmem:[#allocation2 + $0x3c4] ss:$16 sps:$4 sm:$0xff]  }
  0x71   :  { %1328 = vmatprep.subr.bf16.mxu0 %v3494_v62  ;;  %1492 = vmatprep.subr.bf16.mxu1 %v3496_v63  ;;  %v3591_v62 = vld [vmem:[#allocation2 + $0x3cc] ss:$16 sps:$4 sm:$0xff]   ;;  %v3586_v63 = vld [vmem:[#allocation2 + $0x3c0] ss:$16 sps:$4 sm:$0xff]  }
  0x74   :  { %1329 = vmatpush1.bf16.msra.mxu0 %v3498_v0  ;;  %1493 = vmatpush1.bf16.msra.mxu1 %v3499_v1  ;;  %v3589_v0 = vld [vmem:[#allocation2 + $0x3c8] ss:$16 sps:$4 sm:$0xff]   ;;  %v3594_v1 = vld [vmem:[#allocation2 + $0x3e4] ss:$16 sps:$4 sm:$0xff]  }
  0x75   :  { %1339 = vmatprep.subr.bf16.mxu0 %v3504_v2  ;;  %1503 = vmatprep.subr.bf16.mxu1 %v3507_v3  ;;  %v3597_v2 = vld [vmem:[#allocation2 + $0x3ec] ss:$16 sps:$4 sm:$0xff]   ;;  %v3592_v3 = vld [vmem:[#allocation2 + $0x3e0] ss:$16 sps:$4 sm:$0xff]  }
  0x77   :  { %1331 = vmatmul.mubr.bf16.vlgmr.msra.gmra.mrb[0].mxu0 %v2946_v4  ;;  %1495 = vmatmul.mubr.bf16.vlgmr.msra.gmra.mrb[0].mxu1 %v2946_v4  ;;  %v3595_v4 = vld [vmem:[#allocation2 + $0x3e8] ss:$16 sps:$4 sm:$0xff]  }
  0x78   :  { %1340 = vmatpush1.bf16.msra.mxu0 %v3502_v5  ;;  %1504 = vmatpush1.bf16.msra.mxu1 %v3505_v6  ;;  %v3602_v5 = vld [vmem:[#allocation2 + $0x404] ss:$16 sps:$4 sm:$0xff]   ;;  %v3605_v6 = vld [vmem:[#allocation2 + $0x40c] ss:$16 sps:$4 sm:$0xff]  }
  0x79   :  { %1341 = vmatprep.subr.bf16.mxu0 %v3510_v7  ;;  %1505 = vmatprep.subr.bf16.mxu1 %v3513_v8  ;;  %v2948_v7 = vcombine.low %v4096_v29, %v4096_v29  ;;  %v3600_v8 = vld [vmem:[#allocation2 + $0x400] ss:$16 sps:$4 sm:$0xff]   ;;  %v3635_v29 = vld [vmem:[#allocation2 + $0x4ac] ss:$16 sps:$4 sm:$0xff]  }
  0x7a   :  { %1371 = vmatprep.mubr.bf16.mxu0 %v2949_v30  ;;  %1535 = vmatprep.mubr.bf16.mxu1 %v2949_v30  ;;  %v3630_v30 = vld [vmem:[#allocation2 + $0x4a0] ss:$16 sps:$4 sm:$0xff]  }
  0x7c   :  { %1342 = vmatpush1.bf16.msra.mxu0 %v3508_v9  ;;  %1506 = vmatpush1.bf16.msra.mxu1 %v3511_v10  ;;  %v3603_v9 = vld [vmem:[#allocation2 + $0x408] ss:$16 sps:$4 sm:$0xff]   ;;  %v3608_v10 = vld [vmem:[#allocation2 + $0x424] ss:$16 sps:$4 sm:$0xff]  }
  0x7d   :  { %1343 = vmatprep.subr.bf16.mxu0 %v3516_v11  ;;  %1507 = vmatprep.subr.bf16.mxu1 %v3519_v12  ;;  %v4105_v11 = vld [vmem:[%s4157_s0 + $0x10] sm:$0xff]  ;;  %v3611_v12 = vld [vmem:[#allocation2 + $0x42c] ss:$16 sps:$4 sm:$0xff]  }
  0x80   :  { %1344 = vmatpush1.bf16.msra.mxu0 %v3514_v13  ;;  %1508 = vmatpush1.bf16.msra.mxu1 %v3517_v14  ;;  %v2951_v13 = vcombine.high %v4105_v11, %v4105_v11  ;;  %v3606_v14 = vld [vmem:[#allocation2 + $0x420] ss:$16 sps:$4 sm:$0xff]  }
  0x81   :  { %1345 = vmatprep.subr.bf16.mxu0 %v3522_v15  ;;  %1509 = vmatprep.subr.bf16.mxu1 %v3525_v16  ;;  %v3609_v15 = vld [vmem:[#allocation2 + $0x428] ss:$16 sps:$4 sm:$0xff]   ;;  %v3614_v16 = vld [vmem:[#allocation2 + $0x444] ss:$16 sps:$4 sm:$0xff]  }
  0x84   :  { %1346 = vmatpush1.bf16.msra.mxu0 %v3520_v17  ;;  %1510 = vmatpush1.bf16.msra.mxu1 %v3523_v18  ;;  %v3617_v17 = vld [vmem:[#allocation2 + $0x44c] ss:$16 sps:$4 sm:$0xff]   ;;  %v3612_v18 = vld [vmem:[#allocation2 + $0x440] ss:$16 sps:$4 sm:$0xff]  }
  0x85   :  { %1347 = vmatprep.subr.bf16.mxu0 %v3528_v19  ;;  %1511 = vmatprep.subr.bf16.mxu1 %v3531_v20  ;;  %v3615_v19 = vld [vmem:[#allocation2 + $0x448] ss:$16 sps:$4 sm:$0xff]   ;;  %v3620_v20 = vld [vmem:[#allocation2 + $0x464] ss:$16 sps:$4 sm:$0xff]  }
  0x88   :  { %1348 = vmatpush1.bf16.msra.mxu0 %v3526_v21  ;;  %1512 = vmatpush1.bf16.msra.mxu1 %v3529_v22  ;;  %v3623_v21 = vld [vmem:[#allocation2 + $0x46c] ss:$16 sps:$4 sm:$0xff]   ;;  %v3618_v22 = vld [vmem:[#allocation2 + $0x460] ss:$16 sps:$4 sm:$0xff]  }
  0x89   :  { %1349 = vmatprep.subr.bf16.mxu0 %v3534_v23  ;;  %1513 = vmatprep.subr.bf16.mxu1 %v3537_v24  ;;  %v3621_v23 = vld [vmem:[#allocation2 + $0x468] ss:$16 sps:$4 sm:$0xff]   ;;  %v3626_v24 = vld [vmem:[#allocation2 + $0x484] ss:$16 sps:$4 sm:$0xff]  }
  0x8c   :  { %1350 = vmatpush1.bf16.msra.mxu0 %v3532_v25  ;;  %1514 = vmatpush1.bf16.msra.mxu1 %v3535_v26  ;;  %v3629_v25 = vld [vmem:[#allocation2 + $0x48c] ss:$16 sps:$4 sm:$0xff]   ;;  %v3624_v26 = vld [vmem:[#allocation2 + $0x480] ss:$16 sps:$4 sm:$0xff]  }
  0x8d   :  { %1351 = vmatprep.subr.bf16.mxu0 %v3540_v27  ;;  %1515 = vmatprep.subr.bf16.mxu1 %v3543_v28  ;;  %v3627_v27 = vld [vmem:[#allocation2 + $0x488] ss:$16 sps:$4 sm:$0xff]   ;;  %v3632_v28 = vld [vmem:[#allocation2 + $0x4a4] ss:$16 sps:$4 sm:$0xff]  }
  0x90   :  { %1352 = vmatpush1.bf16.msra.mxu0 %v3538_v31  ;;  %1516 = vmatpush1.bf16.msra.mxu1 %v3541_v32  ;;  %v3633_v31 = vld [vmem:[#allocation2 + $0x4a8] ss:$16 sps:$4 sm:$0xff]   ;;  %v3638_v32 = vld [vmem:[#allocation2 + $0x4c4] ss:$16 sps:$4 sm:$0xff]  }
  0x91   :  { %1353 = vmatprep.subr.bf16.mxu0 %v3546_v33  ;;  %1517 = vmatprep.subr.bf16.mxu1 %v3549_v34  ;;  %v3641_v33 = vld [vmem:[#allocation2 + $0x4cc] ss:$16 sps:$4 sm:$0xff]   ;;  %v3636_v34 = vld [vmem:[#allocation2 + $0x4c0] ss:$16 sps:$4 sm:$0xff]  }
  0x94   :  { %1354 = vmatpush1.bf16.msra.mxu0 %v3544_v35  ;;  %1518 = vmatpush1.bf16.msra.mxu1 %v3547_v36  ;;  %v3639_v35 = vld [vmem:[#allocation2 + $0x4c8] ss:$16 sps:$4 sm:$0xff]   ;;  %v3644_v36 = vld [vmem:[#allocation2 + $0x4e4] ss:$16 sps:$4 sm:$0xff]  }
  0x95   :  { %1355 = vmatprep.subr.bf16.mxu0 %v3552_v37  ;;  %1519 = vmatprep.subr.bf16.mxu1 %v3555_v38  ;;  %v3647_v37 = vld [vmem:[#allocation2 + $0x4ec] ss:$16 sps:$4 sm:$0xff]   ;;  %v3642_v38 = vld [vmem:[#allocation2 + $0x4e0] ss:$16 sps:$4 sm:$0xff]  }
  0x98   :  { %1356 = vmatpush1.bf16.msra.mxu0 %v3550_v39  ;;  %1520 = vmatpush1.bf16.msra.mxu1 %v3553_v40  ;;  %v3645_v39 = vld [vmem:[#allocation2 + $0x4e8] ss:$16 sps:$4 sm:$0xff]   ;;  %v3650_v40 = vld [vmem:[#allocation2 + $0x504] ss:$16 sps:$4 sm:$0xff]  }
  0x99   :  { %1357 = vmatprep.subr.bf16.mxu0 %v3558_v41  ;;  %1521 = vmatprep.subr.bf16.mxu1 %v3561_v42  ;;  %v3653_v41 = vld [vmem:[#allocation2 + $0x50c] ss:$16 sps:$4 sm:$0xff]   ;;  %v3648_v42 = vld [vmem:[#allocation2 + $0x500] ss:$16 sps:$4 sm:$0xff]  }
  0x9c   :  { %1358 = vmatpush1.bf16.msra.mxu0 %v3556_v43  ;;  %1522 = vmatpush1.bf16.msra.mxu1 %v3559_v44  ;;  %v3651_v43 = vld [vmem:[#allocation2 + $0x508] ss:$16 sps:$4 sm:$0xff]   ;;  %v3656_v44 = vld [vmem:[#allocation2 + $0x524] ss:$16 sps:$4 sm:$0xff]  }
  0x9d   :  { %1359 = vmatprep.subr.bf16.mxu0 %v3564_v45  ;;  %1523 = vmatprep.subr.bf16.mxu1 %v3567_v46  ;;  %v3659_v45 = vld [vmem:[#allocation2 + $0x52c] ss:$16 sps:$4 sm:$0xff]   ;;  %v3654_v46 = vld [vmem:[#allocation2 + $0x520] ss:$16 sps:$4 sm:$0xff]  }
  0xa0   :  { %1360 = vmatpush1.bf16.msra.mxu0 %v3562_v47  ;;  %1524 = vmatpush1.bf16.msra.mxu1 %v3565_v48  ;;  %v3657_v47 = vld [vmem:[#allocation2 + $0x528] ss:$16 sps:$4 sm:$0xff]   ;;  %v3662_v48 = vld [vmem:[#allocation2 + $0x544] ss:$16 sps:$4 sm:$0xff]  }
  0xa1   :  { %1361 = vmatprep.subr.bf16.mxu0 %v3570_v49  ;;  %1525 = vmatprep.subr.bf16.mxu1 %v3573_v50  ;;  %v3665_v49 = vld [vmem:[#allocation2 + $0x54c] ss:$16 sps:$4 sm:$0xff]   ;;  %v3660_v50 = vld [vmem:[#allocation2 + $0x540] ss:$16 sps:$4 sm:$0xff]  }
  0xa4   :  { %1362 = vmatpush1.bf16.msra.mxu0 %v3568_v51  ;;  %1526 = vmatpush1.bf16.msra.mxu1 %v3571_v52  ;;  %v3663_v51 = vld [vmem:[#allocation2 + $0x548] ss:$16 sps:$4 sm:$0xff]   ;;  %v3668_v52 = vld [vmem:[#allocation2 + $0x564] ss:$16 sps:$4 sm:$0xff]  }
  0xa5   :  { %1363 = vmatprep.subr.bf16.mxu0 %v3576_v53  ;;  %1527 = vmatprep.subr.bf16.mxu1 %v3579_v54  ;;  %v3671_v53 = vld [vmem:[#allocation2 + $0x56c] ss:$16 sps:$4 sm:$0xff]   ;;  %v3666_v54 = vld [vmem:[#allocation2 + $0x560] ss:$16 sps:$4 sm:$0xff]  }
  0xa8   :  { %1364 = vmatpush1.bf16.msra.mxu0 %v3574_v55  ;;  %1528 = vmatpush1.bf16.msra.mxu1 %v3577_v56  ;;  %v3669_v55 = vld [vmem:[#allocation2 + $0x568] ss:$16 sps:$4 sm:$0xff]   ;;  %v3674_v56 = vld [vmem:[#allocation2 + $0x584] ss:$16 sps:$4 sm:$0xff]  }
  0xa9   :  { %1365 = vmatprep.subr.bf16.mxu0 %v3582_v57  ;;  %1529 = vmatprep.subr.bf16.mxu1 %v3585_v58  ;;  %v3677_v57 = vld [vmem:[#allocation2 + $0x58c] ss:$16 sps:$4 sm:$0xff]   ;;  %v3672_v58 = vld [vmem:[#allocation2 + $0x580] ss:$16 sps:$4 sm:$0xff]  }
  0xac   :  { %1366 = vmatpush1.bf16.msra.mxu0 %v3580_v59  ;;  %1530 = vmatpush1.bf16.msra.mxu1 %v3583_v60  ;;  %v3675_v59 = vld [vmem:[#allocation2 + $0x588] ss:$16 sps:$4 sm:$0xff]   ;;  %v3680_v60 = vld [vmem:[#allocation2 + $0x5a4] ss:$16 sps:$4 sm:$0xff]  }
  0xad   :  { %1367 = vmatprep.subr.bf16.mxu0 %v3588_v61  ;;  %1531 = vmatprep.subr.bf16.mxu1 %v3591_v62  ;;  %v3683_v61 = vld [vmem:[#allocation2 + $0x5ac] ss:$16 sps:$4 sm:$0xff]   ;;  %v3678_v62 = vld [vmem:[#allocation2 + $0x5a0] ss:$16 sps:$4 sm:$0xff]  }
  0xb0   :  { %1368 = vmatpush1.bf16.msra.mxu0 %v3586_v63  ;;  %1532 = vmatpush1.bf16.msra.mxu1 %v3589_v0  ;;  %v3681_v63 = vld [vmem:[#allocation2 + $0x5a8] ss:$16 sps:$4 sm:$0xff]   ;;  %v3686_v0 = vld [vmem:[#allocation2 + $0x5c4] ss:$16 sps:$4 sm:$0xff]  }
  0xb1   :  { %1369 = vmatprep.subr.bf16.mxu0 %v3594_v1  ;;  %1533 = vmatprep.subr.bf16.mxu1 %v3597_v2  ;;  %v3689_v1 = vld [vmem:[#allocation2 + $0x5cc] ss:$16 sps:$4 sm:$0xff]   ;;  %v3684_v2 = vld [vmem:[#allocation2 + $0x5c0] ss:$16 sps:$4 sm:$0xff]  }
  0xb4   :  { %1370 = vmatpush1.bf16.msra.mxu0 %v3592_v3  ;;  %1534 = vmatpush1.bf16.msra.mxu1 %v3595_v4  ;;  %v3687_v3 = vld [vmem:[#allocation2 + $0x5c8] ss:$16 sps:$4 sm:$0xff]   ;;  %v3692_v4 = vld [vmem:[#allocation2 + $0x5e4] ss:$16 sps:$4 sm:$0xff]  }
  0xb5   :  { %1380 = vmatprep.subr.bf16.mxu0 %v3602_v5  ;;  %1544 = vmatprep.subr.bf16.mxu1 %v3605_v6  ;;  %v3695_v5 = vld [vmem:[#allocation2 + $0x5ec] ss:$16 sps:$4 sm:$0xff]   ;;  %v3690_v6 = vld [vmem:[#allocation2 + $0x5e0] ss:$16 sps:$4 sm:$0xff]  }
  0xb7   :  { %1372 = vmatmul.mubr.bf16.vlgmr.msra.gmra.mrb[0].mxu0 %v2948_v7  ;;  %1536 = vmatmul.mubr.bf16.vlgmr.msra.gmra.mrb[0].mxu1 %v2948_v7  ;;  %v3693_v7 = vld [vmem:[#allocation2 + $0x5e8] ss:$16 sps:$4 sm:$0xff]  }
  0xb8   :  { %1381 = vmatpush1.bf16.msra.mxu0 %v3600_v8  ;;  %1545 = vmatpush1.bf16.msra.mxu1 %v3603_v9  ;;  %v3700_v8 = vld [vmem:[#allocation2 + $0x604] ss:$16 sps:$4 sm:$0xff]   ;;  %v3703_v9 = vld [vmem:[#allocation2 + $0x60c] ss:$16 sps:$4 sm:$0xff]  }
  0xb9   :  { %1382 = vmatprep.subr.bf16.mxu0 %v3608_v10  ;;  %1546 = vmatprep.subr.bf16.mxu1 %v3611_v12  ;;  %v3698_v10 = vld [vmem:[#allocation2 + $0x600] ss:$16 sps:$4 sm:$0xff]   ;;  %v3701_v12 = vld [vmem:[#allocation2 + $0x608] ss:$16 sps:$4 sm:$0xff]  }
  0xba   :  { %1412 = vmatprep.mubr.bf16.mxu0 %v2951_v13  ;;  %1576 = vmatprep.mubr.bf16.mxu1 %v2951_v13  ;;  %v2950_v13 = vcombine.low %v4105_v11, %v4105_v11  ;;  %v3704_v11 = vld [vmem:[%s4157_s0 + $0x18] ss:$0 sps:$4 sm:$0xff]  }
  0xbc   :  { %1383 = vmatpush1.bf16.msra.mxu0 %v3606_v14  ;;  %1547 = vmatpush1.bf16.msra.mxu1 %v3609_v15  ;;  %v3707_v14 = vld [vmem:[#allocation4 + $0x4] ss:$16 sps:$4 sm:$0xff]   ;;  %v3710_v15 = vld [vmem:[#allocation4 + $0xc] ss:$16 sps:$4 sm:$0xff]  }
  0xbd   :  { %1384 = vmatprep.subr.bf16.mxu0 %v3614_v16  ;;  %1548 = vmatprep.subr.bf16.mxu1 %v3617_v17  ;;  %v4006_v16 = vmov 0   ;;  %v3705_v17 = vld [vmem:[#allocation4] ss:$16 sps:$4 sm:$0xff]  }
  0xc0   :  { %1385 = vmatpush1.bf16.msra.mxu0 %v3612_v18  ;;  %1549 = vmatpush1.bf16.msra.mxu1 %v3615_v19  ;;  %v3708_v18 = vld [vmem:[#allocation4 + $0x8] ss:$16 sps:$4 sm:$0xff]   ;;  %v3713_v19 = vld [vmem:[#allocation4 + $0x24] ss:$16 sps:$4 sm:$0xff]  }
  0xc1   :  { %1386 = vmatprep.subr.bf16.mxu0 %v3620_v20  ;;  %1550 = vmatprep.subr.bf16.mxu1 %v3623_v21  ;;  %v3716_v20 = vld [vmem:[#allocation4 + $0x2c] ss:$16 sps:$4 sm:$0xff]   ;;  %v3711_v21 = vld [vmem:[#allocation4 + $0x20] ss:$16 sps:$4 sm:$0xff]  }
  0xc4   :  { %1387 = vmatpush1.bf16.msra.mxu0 %v3618_v22  ;;  %1551 = vmatpush1.bf16.msra.mxu1 %v3621_v23  ;;  %v3714_v22 = vld [vmem:[#allocation4 + $0x28] ss:$16 sps:$4 sm:$0xff]   ;;  %v3719_v23 = vld [vmem:[#allocation4 + $0x44] ss:$16 sps:$4 sm:$0xff]  }
  0xc5   :  { %1388 = vmatprep.subr.bf16.mxu0 %v3626_v24  ;;  %1552 = vmatprep.subr.bf16.mxu1 %v3629_v25  ;;  %v3722_v24 = vld [vmem:[#allocation4 + $0x4c] ss:$16 sps:$4 sm:$0xff]   ;;  %v3717_v25 = vld [vmem:[#allocation4 + $0x40] ss:$16 sps:$4 sm:$0xff]  }
  0xc8   :  { %1389 = vmatpush1.bf16.msra.mxu0 %v3624_v26  ;;  %1553 = vmatpush1.bf16.msra.mxu1 %v3627_v27  ;;  %v3720_v26 = vld [vmem:[#allocation4 + $0x48] ss:$16 sps:$4 sm:$0xff]   ;;  %v3725_v27 = vld [vmem:[#allocation4 + $0x64] ss:$16 sps:$4 sm:$0xff]  }
  0xc9   :  { %1390 = vmatprep.subr.bf16.mxu0 %v3632_v28  ;;  %1554 = vmatprep.subr.bf16.mxu1 %v3635_v29  ;;  %v3728_v28 = vld [vmem:[#allocation4 + $0x6c] ss:$16 sps:$4 sm:$0xff]   ;;  %v3723_v29 = vld [vmem:[#allocation4 + $0x60] ss:$16 sps:$4 sm:$0xff]  }
  0xcc   :  { %1391 = vmatpush1.bf16.msra.mxu0 %v3630_v30  ;;  %1555 = vmatpush1.bf16.msra.mxu1 %v3633_v31  ;;  %v3726_v30 = vld [vmem:[#allocation4 + $0x68] ss:$16 sps:$4 sm:$0xff]   ;;  %v3731_v31 = vld [vmem:[#allocation4 + $0x84] ss:$16 sps:$4 sm:$0xff]  }
  0xcd   :  { %1392 = vmatprep.subr.bf16.mxu0 %v3638_v32  ;;  %1556 = vmatprep.subr.bf16.mxu1 %v3641_v33  ;;  %v3734_v32 = vld [vmem:[#allocation4 + $0x8c] ss:$16 sps:$4 sm:$0xff]   ;;  %v3729_v33 = vld [vmem:[#allocation4 + $0x80] ss:$16 sps:$4 sm:$0xff]  }
  0xd0   :  { %1393 = vmatpush1.bf16.msra.mxu0 %v3636_v34  ;;  %1557 = vmatpush1.bf16.msra.mxu1 %v3639_v35  ;;  %v3732_v34 = vld [vmem:[#allocation4 + $0x88] ss:$16 sps:$4 sm:$0xff]   ;;  %v3737_v35 = vld [vmem:[#allocation4 + $0xa4] ss:$16 sps:$4 sm:$0xff]  }
  0xd1   :  { %1394 = vmatprep.subr.bf16.mxu0 %v3644_v36  ;;  %1558 = vmatprep.subr.bf16.mxu1 %v3647_v37  ;;  %v3740_v36 = vld [vmem:[#allocation4 + $0xac] ss:$16 sps:$4 sm:$0xff]   ;;  %v3735_v37 = vld [vmem:[#allocation4 + $0xa0] ss:$16 sps:$4 sm:$0xff]  }
  0xd4   :  { %1395 = vmatpush1.bf16.msra.mxu0 %v3642_v38  ;;  %1559 = vmatpush1.bf16.msra.mxu1 %v3645_v39  ;;  %v3738_v38 = vld [vmem:[#allocation4 + $0xa8] ss:$16 sps:$4 sm:$0xff]   ;;  %v3743_v39 = vld [vmem:[#allocation4 + $0xc4] ss:$16 sps:$4 sm:$0xff]  }
  0xd5   :  { %1396 = vmatprep.subr.bf16.mxu0 %v3650_v40  ;;  %1560 = vmatprep.subr.bf16.mxu1 %v3653_v41  ;;  %v3746_v40 = vld [vmem:[#allocation4 + $0xcc] ss:$16 sps:$4 sm:$0xff]   ;;  %v3741_v41 = vld [vmem:[#allocation4 + $0xc0] ss:$16 sps:$4 sm:$0xff]  }
  0xd8   :  { %1397 = vmatpush1.bf16.msra.mxu0 %v3648_v42  ;;  %1561 = vmatpush1.bf16.msra.mxu1 %v3651_v43  ;;  %v3744_v42 = vld [vmem:[#allocation4 + $0xc8] ss:$16 sps:$4 sm:$0xff]   ;;  %v3749_v43 = vld [vmem:[#allocation4 + $0xe4] ss:$16 sps:$4 sm:$0xff]  }
  0xd9   :  { %1398 = vmatprep.subr.bf16.mxu0 %v3656_v44  ;;  %1562 = vmatprep.subr.bf16.mxu1 %v3659_v45  ;;  %v3752_v44 = vld [vmem:[#allocation4 + $0xec] ss:$16 sps:$4 sm:$0xff]   ;;  %v3747_v45 = vld [vmem:[#allocation4 + $0xe0] ss:$16 sps:$4 sm:$0xff]  }
  0xdc   :  { %1399 = vmatpush1.bf16.msra.mxu0 %v3654_v46  ;;  %1563 = vmatpush1.bf16.msra.mxu1 %v3657_v47  ;;  %v3750_v46 = vld [vmem:[#allocation4 + $0xe8] ss:$16 sps:$4 sm:$0xff]   ;;  %v3755_v47 = vld [vmem:[#allocation4 + $0x104] ss:$16 sps:$4 sm:$0xff]  }
  0xdd   :  { %1400 = vmatprep.subr.bf16.mxu0 %v3662_v48  ;;  %1564 = vmatprep.subr.bf16.mxu1 %v3665_v49  ;;  %v3758_v48 = vld [vmem:[#allocation4 + $0x10c] ss:$16 sps:$4 sm:$0xff]   ;;  %v3753_v49 = vld [vmem:[#allocation4 + $0x100] ss:$16 sps:$4 sm:$0xff]  }
  0xe0   :  { %1401 = vmatpush1.bf16.msra.mxu0 %v3660_v50  ;;  %1565 = vmatpush1.bf16.msra.mxu1 %v3663_v51  ;;  %v3756_v50 = vld [vmem:[#allocation4 + $0x108] ss:$16 sps:$4 sm:$0xff]   ;;  %v3761_v51 = vld [vmem:[#allocation4 + $0x124] ss:$16 sps:$4 sm:$0xff]  }
  0xe1   :  { %1402 = vmatprep.subr.bf16.mxu0 %v3668_v52  ;;  %1566 = vmatprep.subr.bf16.mxu1 %v3671_v53  ;;  %v3764_v52 = vld [vmem:[#allocation4 + $0x12c] ss:$16 sps:$4 sm:$0xff]   ;;  %v3759_v53 = vld [vmem:[#allocation4 + $0x120] ss:$16 sps:$4 sm:$0xff]  }
  0xe4   :  { %1403 = vmatpush1.bf16.msra.mxu0 %v3666_v54  ;;  %1567 = vmatpush1.bf16.msra.mxu1 %v3669_v55  ;;  %v3762_v54 = vld [vmem:[#allocation4 + $0x128] ss:$16 sps:$4 sm:$0xff]   ;;  %v3767_v55 = vld [vmem:[#allocation4 + $0x144] ss:$16 sps:$4 sm:$0xff]  }
  0xe5   :  { %1404 = vmatprep.subr.bf16.mxu0 %v3674_v56  ;;  %1568 = vmatprep.subr.bf16.mxu1 %v3677_v57  ;;  %v3770_v56 = vld [vmem:[#allocation4 + $0x14c] ss:$16 sps:$4 sm:$0xff]   ;;  %v3765_v57 = vld [vmem:[#allocation4 + $0x140] ss:$16 sps:$4 sm:$0xff]  }
  0xe8   :  { %1405 = vmatpush1.bf16.msra.mxu0 %v3672_v58  ;;  %1569 = vmatpush1.bf16.msra.mxu1 %v3675_v59  ;;  %v3768_v58 = vld [vmem:[#allocation4 + $0x148] ss:$16 sps:$4 sm:$0xff]   ;;  %v3773_v59 = vld [vmem:[#allocation4 + $0x164] ss:$16 sps:$4 sm:$0xff]  }
  0xe9   :  { %1406 = vmatprep.subr.bf16.mxu0 %v3680_v60  ;;  %1570 = vmatprep.subr.bf16.mxu1 %v3683_v61  ;;  %v3776_v60 = vld [vmem:[#allocation4 + $0x16c] ss:$16 sps:$4 sm:$0xff]   ;;  %v3771_v61 = vld [vmem:[#allocation4 + $0x160] ss:$16 sps:$4 sm:$0xff]  }
  0xec   :  { %1407 = vmatpush1.bf16.msra.mxu0 %v3678_v62  ;;  %1571 = vmatpush1.bf16.msra.mxu1 %v3681_v63  ;;  %v3774_v62 = vld [vmem:[#allocation4 + $0x168] ss:$16 sps:$4 sm:$0xff]   ;;  %v3779_v63 = vld [vmem:[#allocation4 + $0x184] ss:$16 sps:$4 sm:$0xff]  }
  0xed   :  { %1408 = vmatprep.subr.bf16.mxu0 %v3686_v0  ;;  %1572 = vmatprep.subr.bf16.mxu1 %v3689_v1  ;;  %v3782_v0 = vld [vmem:[#allocation4 + $0x18c] ss:$16 sps:$4 sm:$0xff]   ;;  %v3777_v1 = vld [vmem:[#allocation4 + $0x180] ss:$16 sps:$4 sm:$0xff]  }
  0xf0   :  { %1409 = vmatpush1.bf16.msra.mxu0 %v3684_v2  ;;  %1573 = vmatpush1.bf16.msra.mxu1 %v3687_v3  ;;  %v3780_v2 = vld [vmem:[#allocation4 + $0x188] ss:$16 sps:$4 sm:$0xff]   ;;  %v3785_v3 = vld [vmem:[#allocation4 + $0x1a4] ss:$16 sps:$4 sm:$0xff]  }
  0xf1   :  { %1410 = vmatprep.subr.bf16.mxu0 %v3692_v4  ;;  %1574 = vmatprep.subr.bf16.mxu1 %v3695_v5  ;;  %v3788_v4 = vld [vmem:[#allocation4 + $0x1ac] ss:$16 sps:$4 sm:$0xff]   ;;  %v3783_v5 = vld [vmem:[#allocation4 + $0x1a0] ss:$16 sps:$4 sm:$0xff]  }
  0xf4   :  { %1411 = vmatpush1.bf16.msra.mxu0 %v3690_v6  ;;  %1575 = vmatpush1.bf16.msra.mxu1 %v3693_v7  ;;  %v3786_v6 = vld [vmem:[#allocation4 + $0x1a8] ss:$16 sps:$4 sm:$0xff]   ;;  %v3791_v7 = vld [vmem:[#allocation4 + $0x1c4] ss:$16 sps:$4 sm:$0xff]  }
  0xf5   :  { %1421 = vmatprep.subr.bf16.mxu0 %v3700_v8  ;;  %1585 = vmatprep.subr.bf16.mxu1 %v3703_v9  ;;  %v3794_v8 = vld [vmem:[#allocation4 + $0x1cc] ss:$16 sps:$4 sm:$0xff]   ;;  %v3789_v9 = vld [vmem:[#allocation4 + $0x1c0] ss:$16 sps:$4 sm:$0xff]  }
  0xf7   :  { %1413 = vmatmul.mubr.bf16.vlgmr.msra.gmra.mrb[0].mxu0 %v2950_v13  ;;  %1577 = vmatmul.mubr.bf16.vlgmr.msra.gmra.mrb[0].mxu1 %v2950_v13  ;;  %v3800_v13 = vld [vmem:[#allocation4 + $0x1ec] ss:$16 sps:$4 sm:$0xff]  }
  0xf8   :  { %1422 = vmatpush1.bf16.msra.mxu0 %v3698_v10  ;;  %1586 = vmatpush1.bf16.msra.mxu1 %v3701_v12  ;;  %v3792_v10 = vld [vmem:[#allocation4 + $0x1c8] ss:$16 sps:$4 sm:$0xff]   ;;  %v3797_v12 = vld [vmem:[#allocation4 + $0x1e4] ss:$16 sps:$4 sm:$0xff]  }
  0xf9   :  { %1453 = vmatprep.mubr.bf16.mxu0 %v4006_v16  ;;  %1617 = vmatprep.mubr.bf16.mxu1 %v4006_v16  ;;  %v3803_v16 = vld [vmem:[#allocation4 + $0x204] ss:$16 sps:$4 sm:$0xff]  }
  0xfa   :  { %2424 = vmatprep.subr.bf16.mxu0 %v3707_v14  ;;  %2506 = vmatprep.subr.bf16.mxu1 %v3710_v15  ;;  %v3795_v14 = vld [vmem:[#allocation4 + $0x1e0] ss:$16 sps:$4 sm:$0xff]   ;;  %v3798_v15 = vld [vmem:[#allocation4 + $0x1e8] ss:$16 sps:$4 sm:$0xff]  }
 0x103   :  { %3149 = vmatmul.mubr.msk.bf16.vlgmr.msra.gmra.mrb[0].mxu0 %vm1294_vm0, %v3704_v11  ;;  %3150 = vmatmul.mubr.msk.bf16.vlgmr.msra.gmra.mrb[0].mxu1 %vm1294_vm0, %v3704_v11  ;;  %v3806_v11 = vld [vmem:[#allocation4 + $0x20c] ss:$16 sps:$4 sm:$0xff]  }
 0x104   :  { %2425 = vmatpush1.bf16.msra.mxu0 %v3705_v17  ;;  %2507 = vmatpush1.bf16.msra.mxu1 %v3708_v18  ;;  %v270_v17 = vlaneseq }
 0x105   :  { %2426 = vmatprep.subr.bf16.mxu0 %v3713_v19  ;;  %2508 = vmatprep.subr.bf16.mxu1 %v3716_v20  ;;  %v4120_v20 = vld [vmem:[%s4159_s2] sm:$0xf] }
 0x106   :  { %v4114_v18 = vshrl.u32 %v270_v17, 7  ;;  %v3863_v17 = vld [vmem:[#allocation4 + $0x344] ss:$16 sps:$4 sm:$0xff]  }
 0x108   :  { %2427 = vmatpush1.bf16.msra.mxu0 %v3711_v21  ;;  %2509 = vmatpush1.bf16.msra.mxu1 %v3714_v22  ;;  %v272_v19 = vsub.s32 0, %v4114_v18  ;;  %v276_v21 = vsub.s32 1, %v4114_v18  ;;  %v284_v22 = vsub.s32 3, %v4114_v18 }
 0x109   :  { %2428 = vmatprep.subr.bf16.mxu0 %v3719_v23  ;;  %2510 = vmatprep.subr.bf16.mxu1 %v3722_v24 }
 0x10a   :  { %v273_v23 = vrot.slane %v4120_v20, %v272_v19  ;;  %v277_v24 = vrot.slane %v4120_v20, %v276_v21 }
 0x10c   :  { %2429 = vmatpush1.bf16.msra.mxu0 %v3717_v25  ;;  %2511 = vmatpush1.bf16.msra.mxu1 %v3720_v26  ;;  %v285_v25 = vrot.slane %v4120_v20, %v284_v22 }
 0x10d   :  { %2430 = vmatprep.subr.bf16.mxu0 %v3725_v27  ;;  %2512 = vmatprep.subr.bf16.mxu1 %v3728_v28 }
 0x110   :  { %2431 = vmatpush1.bf16.msra.mxu0 %v3723_v29  ;;  %2513 = vmatpush1.bf16.msra.mxu1 %v3726_v30 }
 0x111   :  { %2432 = vmatprep.subr.bf16.mxu0 %v3731_v31  ;;  %2514 = vmatprep.subr.bf16.mxu1 %v3734_v32 }
 0x114   :  { %2433 = vmatpush1.bf16.msra.mxu0 %v3729_v33  ;;  %2515 = vmatpush1.bf16.msra.mxu1 %v3732_v34 }
 0x115   :  { %2434 = vmatprep.subr.bf16.mxu0 %v3737_v35  ;;  %2516 = vmatprep.subr.bf16.mxu1 %v3740_v36 }
 0x118   :  { %2435 = vmatpush1.bf16.msra.mxu0 %v3735_v37  ;;  %2517 = vmatpush1.bf16.msra.mxu1 %v3738_v38 }
 0x119   :  { %2436 = vmatprep.subr.bf16.mxu0 %v3743_v39  ;;  %2518 = vmatprep.subr.bf16.mxu1 %v3746_v40 }
 0x11c   :  { %2437 = vmatpush1.bf16.msra.mxu0 %v3741_v41  ;;  %2519 = vmatpush1.bf16.msra.mxu1 %v3744_v42  ;;  %v3801_v41 = vld [vmem:[#allocation4 + $0x200] ss:$16 sps:$4 sm:$0xff]   ;;  %v3804_v42 = vld [vmem:[#allocation4 + $0x208] ss:$16 sps:$4 sm:$0xff]  }
 0x11d   :  { %2438 = vmatprep.subr.bf16.mxu0 %v3749_v43  ;;  %2520 = vmatprep.subr.bf16.mxu1 %v3752_v44  ;;  %v3809_v44 = vld [vmem:[#allocation4 + $0x224] ss:$16 sps:$4 sm:$0xff]  }
 0x120   :  { %2439 = vmatpush1.bf16.msra.mxu0 %v3747_v45  ;;  %2521 = vmatpush1.bf16.msra.mxu1 %v3750_v46  ;;  %v3812_v45 = vld [vmem:[#allocation4 + $0x22c] ss:$16 sps:$4 sm:$0xff]  }
 0x121   :  { %2440 = vmatprep.subr.bf16.mxu0 %v3755_v47  ;;  %2522 = vmatprep.subr.bf16.mxu1 %v3758_v48  ;;  %v3807_v47 = vld [vmem:[#allocation4 + $0x220] ss:$16 sps:$4 sm:$0xff]   ;;  %v3810_v48 = vld [vmem:[#allocation4 + $0x228] ss:$16 sps:$4 sm:$0xff]  }
 0x124   :  { %2441 = vmatpush1.bf16.msra.mxu0 %v3753_v49  ;;  %2523 = vmatpush1.bf16.msra.mxu1 %v3756_v50  ;;  %v3815_v49 = vld [vmem:[#allocation4 + $0x244] ss:$16 sps:$4 sm:$0xff]   ;;  %v3818_v50 = vld [vmem:[#allocation4 + $0x24c] ss:$16 sps:$4 sm:$0xff]  }
 0x125   :  { %2442 = vmatprep.subr.bf16.mxu0 %v3761_v51  ;;  %2524 = vmatprep.subr.bf16.mxu1 %v3764_v52  ;;  %v3813_v51 = vld [vmem:[#allocation4 + $0x240] ss:$16 sps:$4 sm:$0xff]   ;;  %v3816_v52 = vld [vmem:[#allocation4 + $0x248] ss:$16 sps:$4 sm:$0xff]  }
 0x128   :  { %2443 = vmatpush1.bf16.msra.mxu0 %v3759_v53  ;;  %2525 = vmatpush1.bf16.msra.mxu1 %v3762_v54  ;;  %v3821_v53 = vld [vmem:[#allocation4 + $0x264] ss:$16 sps:$4 sm:$0xff]   ;;  %v3824_v54 = vld [vmem:[#allocation4 + $0x26c] ss:$16 sps:$4 sm:$0xff]  }
 0x129   :  { %2444 = vmatprep.subr.bf16.mxu0 %v3767_v55  ;;  %2526 = vmatprep.subr.bf16.mxu1 %v3770_v56  ;;  %v3819_v55 = vld [vmem:[#allocation4 + $0x260] ss:$16 sps:$4 sm:$0xff]   ;;  %v3822_v56 = vld [vmem:[#allocation4 + $0x268] ss:$16 sps:$4 sm:$0xff]  }
 0x12c   :  { %2445 = vmatpush1.bf16.msra.mxu0 %v3765_v57  ;;  %2527 = vmatpush1.bf16.msra.mxu1 %v3768_v58  ;;  %v3827_v57 = vld [vmem:[#allocation4 + $0x284] ss:$16 sps:$4 sm:$0xff]   ;;  %v3830_v58 = vld [vmem:[#allocation4 + $0x28c] ss:$16 sps:$4 sm:$0xff]  }
 0x12d   :  { %2446 = vmatprep.subr.bf16.mxu0 %v3773_v59  ;;  %2528 = vmatprep.subr.bf16.mxu1 %v3776_v60  ;;  %v3825_v59 = vld [vmem:[#allocation4 + $0x280] ss:$16 sps:$4 sm:$0xff]   ;;  %v3828_v60 = vld [vmem:[#allocation4 + $0x288] ss:$16 sps:$4 sm:$0xff]  }
 0x130   :  { %2447 = vmatpush1.bf16.msra.mxu0 %v3771_v61  ;;  %2529 = vmatpush1.bf16.msra.mxu1 %v3774_v62  ;;  %v3833_v61 = vld [vmem:[#allocation4 + $0x2a4] ss:$16 sps:$4 sm:$0xff]   ;;  %v3836_v62 = vld [vmem:[#allocation4 + $0x2ac] ss:$16 sps:$4 sm:$0xff]  }
 0x131   :  { %2448 = vmatprep.subr.bf16.mxu0 %v3779_v63  ;;  %2530 = vmatprep.subr.bf16.mxu1 %v3782_v0  ;;  %v3831_v63 = vld [vmem:[#allocation4 + $0x2a0] ss:$16 sps:$4 sm:$0xff]   ;;  %v3834_v0 = vld [vmem:[#allocation4 + $0x2a8] ss:$16 sps:$4 sm:$0xff]  }
 0x134   :  { %2449 = vmatpush1.bf16.msra.mxu0 %v3777_v1  ;;  %2531 = vmatpush1.bf16.msra.mxu1 %v3780_v2  ;;  %v3839_v1 = vld [vmem:[#allocation4 + $0x2c4] ss:$16 sps:$4 sm:$0xff]   ;;  %v3842_v2 = vld [vmem:[#allocation4 + $0x2cc] ss:$16 sps:$4 sm:$0xff]  }
 0x135   :  { %2450 = vmatprep.subr.bf16.mxu0 %v3785_v3  ;;  %2532 = vmatprep.subr.bf16.mxu1 %v3788_v4  ;;  %v3837_v3 = vld [vmem:[#allocation4 + $0x2c0] ss:$16 sps:$4 sm:$0xff]   ;;  %v3840_v4 = vld [vmem:[#allocation4 + $0x2c8] ss:$16 sps:$4 sm:$0xff]  }
 0x138   :  { %2451 = vmatpush1.bf16.msra.mxu0 %v3783_v5  ;;  %2533 = vmatpush1.bf16.msra.mxu1 %v3786_v6  ;;  %v3845_v5 = vld [vmem:[#allocation4 + $0x2e4] ss:$16 sps:$4 sm:$0xff]   ;;  %v3848_v6 = vld [vmem:[#allocation4 + $0x2ec] ss:$16 sps:$4 sm:$0xff]  }
 0x139   :  { %2452 = vmatprep.subr.bf16.mxu0 %v3791_v7  ;;  %2534 = vmatprep.subr.bf16.mxu1 %v3794_v8  ;;  %v3843_v7 = vld [vmem:[#allocation4 + $0x2e0] ss:$16 sps:$4 sm:$0xff]   ;;  %v3846_v8 = vld [vmem:[#allocation4 + $0x2e8] ss:$16 sps:$4 sm:$0xff]  }
 0x13c   :  { %2453 = vmatpush1.bf16.msra.mxu0 %v3789_v9  ;;  %2535 = vmatpush1.bf16.msra.mxu1 %v3792_v10  ;;  %v3851_v9 = vld [vmem:[#allocation4 + $0x304] ss:$16 sps:$4 sm:$0xff]   ;;  %v3854_v10 = vld [vmem:[#allocation4 + $0x30c] ss:$16 sps:$4 sm:$0xff]  }
 0x13d   :  { %2454 = vmatprep.subr.bf16.mxu0 %v3797_v12  ;;  %2536 = vmatprep.subr.bf16.mxu1 %v3800_v13  ;;  %v3849_v12 = vld [vmem:[#allocation4 + $0x300] ss:$16 sps:$4 sm:$0xff]   ;;  %v3852_v13 = vld [vmem:[#allocation4 + $0x308] ss:$16 sps:$4 sm:$0xff]  }
 0x140   :  { %2455 = vmatpush1.bf16.msra.mxu0 %v3795_v14  ;;  %2537 = vmatpush1.bf16.msra.mxu1 %v3798_v15  ;;  %v3857_v14 = vld [vmem:[#allocation4 + $0x324] ss:$16 sps:$4 sm:$0xff]   ;;  %v3860_v15 = vld [vmem:[#allocation4 + $0x32c] ss:$16 sps:$4 sm:$0xff]  }
 0x141   :  { %2465 = vmatprep.subr.bf16.mxu0 %v3803_v16  ;;  %2547 = vmatprep.subr.bf16.mxu1 %v3806_v11  ;;  %v3855_v16 = vld [vmem:[#allocation4 + $0x320] ss:$16 sps:$4 sm:$0xff]   ;;  %v3858_v11 = vld [vmem:[#allocation4 + $0x328] ss:$16 sps:$4 sm:$0xff]  }
 0x1d6   :  { %v1455_v26 = vpop.f32.mrb[0].mxu0  ;;  %v4133_v27 = vpop.f32.mrb[0].mxu1 }
 0x1d7   :  { %v3356_v28 = vadd.f32 %v1455_v26, %v273_v23  ;;  %v1457_v29 = vpop.f32.mrb[1].mxu0  ;;  %v1621_v30 = vpop.f32.mrb[1].mxu1  ;;  %v3866_v23 = vld [vmem:[#allocation4 + $0x34c] ss:$16 sps:$4 sm:$0xff]   ;;  %v3869_v26 = vld [vmem:[#allocation4 + $0x364] ss:$16 sps:$4 sm:$0xff]  }
 0x1d8   :  { %v3357_v31 = vadd.f32 %v1457_v29, %v277_v24  ;;  %v3359_v32 = vadd.f32 %v1621_v30, %v285_v25  ;;  %v1459_v33 = vpop.f32.mrb[2].mxu0  ;;  %v1623_v34 = vpop.f32.mrb[2].mxu1  ;;  %v3861_v24 = vld [vmem:[#allocation4 + $0x340] ss:$16 sps:$4 sm:$0xff]   ;;  %v3864_v25 = vld [vmem:[#allocation4 + $0x348] ss:$16 sps:$4 sm:$0xff]  }
 0x1d9   :  { %v1626_v35 = vmax.f32 %v3356_v28, 0.0  ;;  %v1460_v36 = vpop.f32.mrb[3].mxu0  ;;  %v1624_v37 = vpop.f32.mrb[3].mxu1  ;;  %v3872_v28 = vld [vmem:[#allocation4 + $0x36c] ss:$16 sps:$4 sm:$0xff]  }
 0x1da   :  { %v1627_v38 = vmax.f32 %v3357_v31, 0.0  ;;  %v1629_v39 = vmax.f32 %v3359_v32, 0.0  ;;  %v3867_v29 = vld [vmem:[#allocation4 + $0x360] ss:$16 sps:$4 sm:$0xff]   ;;  %v3870_v30 = vld [vmem:[#allocation4 + $0x368] ss:$16 sps:$4 sm:$0xff]  }
 0x1db   :  { %v1630_v43 = vpack.c.bf16 %v1626_v35, %v1626_v35  ;;  %v3875_v31 = vld [vmem:[#allocation4 + $0x384] ss:$16 sps:$4 sm:$0xff]   ;;  %v3878_v32 = vld [vmem:[#allocation4 + $0x38c] ss:$16 sps:$4 sm:$0xff]   ;;  %v3873_v33 = vld [vmem:[#allocation4 + $0x380] ss:$16 sps:$4 sm:$0xff]  }
 0x1dc   :  { %v1631_v40 = vpack.c.bf16 %v1627_v38, %v1627_v38  ;;  %v1633_v46 = vpack.c.bf16 %v1629_v39, %v1629_v39  ;;  %v3876_v34 = vld [vmem:[#allocation4 + $0x388] ss:$16 sps:$4 sm:$0xff]   ;;  %v280_v35 = vsub.s32 2, %v4114_v18  ;;  %v3881_v36 = vld [vmem:[#allocation4 + $0x3a4] ss:$16 sps:$4 sm:$0xff]  }
 0x1dd   :  { %v3884_v37 = vld [vmem:[#allocation4 + $0x3ac] ss:$16 sps:$4 sm:$0xff]   ;;  %v3879_v38 = vld [vmem:[#allocation4 + $0x3a0] ss:$16 sps:$4 sm:$0xff]   ;;  %v3882_v39 = vld [vmem:[#allocation4 + $0x3a8] ss:$16 sps:$4 sm:$0xff]  }
 0x1de   :  { %2456 = vmatprep.mubr.bf16.mxu0 %v1631_v40  ;;  %2538 = vmatprep.mubr.bf16.mxu1 %v1631_v40  ;;  %v281_v40 = vrot.slane %v4120_v20, %v280_v35  ;;  %v3897_v20 = vld [vmem:[#allocation6 + $0x40] sm:$0xff]  }
 0x1df   :  { %2457 = vmatmul.mubr.bf16.vlgmr.msra.gmra.mrb[4].mxu0 %v1630_v43  ;;  %2539 = vmatmul.mubr.bf16.vlgmr.msra.gmra.mrb[4].mxu1 %v1630_v43  ;;  %v3885_v43 = vld [vmem:[#allocation4 + $0x3c0] ss:$16 sps:$4 sm:$0xff]  }
 0x1e0   :  { %2466 = vmatpush1.bf16.msra.mxu0 %v3801_v41  ;;  %2548 = vmatpush1.bf16.msra.mxu1 %v3804_v42  ;;  %v3887_v41 = vld [vmem:[#allocation4 + $0x3c4] ss:$16 sps:$4 sm:$0xff]   ;;  %v3890_v42 = vld [vmem:[#allocation4 + $0x3cc] ss:$16 sps:$4 sm:$0xff]  }
 0x1e1   :  { %2497 = vmatprep.mubr.bf16.mxu0 %v1633_v46  ;;  %2579 = vmatprep.mubr.bf16.mxu1 %v1633_v46  ;;  %v3893_v46 = vld [vmem:[#allocation4 + $0x3e4] ss:$16 sps:$4 sm:$0xff]  }
 0x1e2   :  { %2467 = vmatprep.subr.bf16.mxu0 %v3809_v44  ;;  %2549 = vmatprep.subr.bf16.mxu1 %v3812_v45  ;;  %v3888_v44 = vld [vmem:[#allocation4 + $0x3c8] ss:$16 sps:$4 sm:$0xff]   ;;  %v3358_v45 = vadd.f32 %v4133_v27, %v281_v40 }
 0x1e3   :  { %v3901_v27 = vld [vmem:[#allocation6 + $0x48] sm:$0xff]  }
 0x1e4   :  { %2468 = vmatpush1.bf16.msra.mxu0 %v3807_v47  ;;  %2550 = vmatpush1.bf16.msra.mxu1 %v3810_v48  ;;  %v3896_v47 = vld [vmem:[#allocation4 + $0x3ec] ss:$16 sps:$4 sm:$0xff]   ;;  %v3891_v48 = vld [vmem:[#allocation4 + $0x3e0] ss:$16 sps:$4 sm:$0xff]  }
 0x1e5   :  { %2469 = vmatprep.subr.bf16.mxu0 %v3815_v49  ;;  %2551 = vmatprep.subr.bf16.mxu1 %v3818_v50  ;;  %v3894_v49 = vld [vmem:[#allocation4 + $0x3e8] ss:$16 sps:$4 sm:$0xff]   ;;  %v1628_v50 = vmax.f32 %v3358_v45, 0.0 }
 0x1e8   :  { %2470 = vmatpush1.bf16.msra.mxu0 %v3813_v51  ;;  %2552 = vmatpush1.bf16.msra.mxu1 %v3816_v52  ;;  %v3898_v51 = vld [vmem:[#allocation6 + $0xc0] sm:$0xff]  }
 0x1e9   :  { %2471 = vmatprep.subr.bf16.mxu0 %v3821_v53  ;;  %2553 = vmatprep.subr.bf16.mxu1 %v3824_v54  ;;  %v3899_v52 = vld [vmem:[#allocation6] sm:$0xff]   ;;  %v1632_v54 = vpack.c.bf16 %v1628_v50, %v1628_v50 }
 0x1ea   :  { %v3900_v53 = vld [vmem:[#allocation6 + $0x80] sm:$0xff]  }
 0x1ec   :  { %2472 = vmatpush1.bf16.msra.mxu0 %v3819_v55  ;;  %2554 = vmatpush1.bf16.msra.mxu1 %v3822_v56  ;;  %v3902_v55 = vld [vmem:[#allocation6 + $0xc8] sm:$0xff]  }
 0x1ed   :  { %2473 = vmatprep.subr.bf16.mxu0 %v3827_v57  ;;  %2555 = vmatprep.subr.bf16.mxu1 %v3830_v58  ;;  %v3903_v56 = vld [vmem:[#allocation6 + $0x8] sm:$0xff]   ;;  %v3905_v58 = vld [vmem:[#allocation6 + $0x50] sm:$0xff]  }
 0x1ee   :  { %v3904_v57 = vld [vmem:[#allocation6 + $0x88] sm:$0xff]  }
 0x1f0   :  { %2474 = vmatpush1.bf16.msra.mxu0 %v3825_v59  ;;  %2556 = vmatpush1.bf16.msra.mxu1 %v3828_v60  ;;  %v3906_v59 = vld [vmem:[#allocation6 + $0xd0] sm:$0xff]  }
 0x1f1   :  { %2475 = vmatprep.subr.bf16.mxu0 %v3833_v61  ;;  %2557 = vmatprep.subr.bf16.mxu1 %v3836_v62  ;;  %v3907_v60 = vld [vmem:[#allocation6 + $0x10] sm:$0xff]   ;;  %v3909_v62 = vld [vmem:[#allocation6 + $0x58] sm:$0xff]  }
 0x1f2   :  { %v3908_v61 = vld [vmem:[#allocation6 + $0x90] sm:$0xff]  }
 0x1f4   :  { %2476 = vmatpush1.bf16.msra.mxu0 %v3831_v63  ;;  %2558 = vmatpush1.bf16.msra.mxu1 %v3834_v0  ;;  %v3910_v63 = vld [vmem:[#allocation6 + $0xd8] sm:$0xff]  }
 0x1f5   :  { %2477 = vmatprep.subr.bf16.mxu0 %v3839_v1  ;;  %2559 = vmatprep.subr.bf16.mxu1 %v3842_v2  ;;  %v3911_v0 = vld [vmem:[#allocation6 + $0x18] sm:$0xff]   ;;  %v3913_v2 = vld [vmem:[#allocation6 + $0x60] sm:$0xff]  }
 0x1f6   :  { %v3912_v1 = vld [vmem:[#allocation6 + $0x98] sm:$0xff]  }
 0x1f8   :  { %2478 = vmatpush1.bf16.msra.mxu0 %v3837_v3  ;;  %2560 = vmatpush1.bf16.msra.mxu1 %v3840_v4  ;;  %v3914_v3 = vld [vmem:[#allocation6 + $0xe0] sm:$0xff]  }
 0x1f9   :  { %2479 = vmatprep.subr.bf16.mxu0 %v3845_v5  ;;  %2561 = vmatprep.subr.bf16.mxu1 %v3848_v6  ;;  %v3915_v4 = vld [vmem:[#allocation6 + $0x20] sm:$0xff]   ;;  %v3917_v6 = vld [vmem:[#allocation6 + $0x68] sm:$0xff]  }
 0x1fa   :  { %v3916_v5 = vld [vmem:[#allocation6 + $0xa0] sm:$0xff]  }
 0x1fc   :  { %2480 = vmatpush1.bf16.msra.mxu0 %v3843_v7  ;;  %2562 = vmatpush1.bf16.msra.mxu1 %v3846_v8  ;;  %v3918_v7 = vld [vmem:[#allocation6 + $0xe8] sm:$0xff]  }
 0x1fd   :  { %2481 = vmatprep.subr.bf16.mxu0 %v3851_v9  ;;  %2563 = vmatprep.subr.bf16.mxu1 %v3854_v10  ;;  %v3919_v8 = vld [vmem:[#allocation6 + $0x28] sm:$0xff]   ;;  %v3921_v10 = vld [vmem:[#allocation6 + $0x70] sm:$0xff]  }
 0x1fe   :  { %v3920_v9 = vld [vmem:[#allocation6 + $0xa8] sm:$0xff]  }
 0x200   :  { %2482 = vmatpush1.bf16.msra.mxu0 %v3849_v12  ;;  %2564 = vmatpush1.bf16.msra.mxu1 %v3852_v13  ;;  %v3922_v12 = vld [vmem:[#allocation6 + $0xf0] sm:$0xff]  }
 0x201   :  { %2483 = vmatprep.subr.bf16.mxu0 %v3857_v14  ;;  %2565 = vmatprep.subr.bf16.mxu1 %v3860_v15  ;;  %v3923_v13 = vld [vmem:[#allocation6 + $0x30] sm:$0xff]   ;;  %v3925_v15 = vld [vmem:[#allocation6 + $0x78] sm:$0xff]  }
 0x202   :  { %v3924_v14 = vld [vmem:[#allocation6 + $0xb0] sm:$0xff]  }
 0x204   :  { %2484 = vmatpush1.bf16.msra.mxu0 %v3855_v16  ;;  %2566 = vmatpush1.bf16.msra.mxu1 %v3858_v11  ;;  %v3926_v16 = vld [vmem:[#allocation6 + $0xf8] sm:$0xff]  }
 0x205   :  { %2485 = vmatprep.subr.bf16.mxu0 %v3863_v17  ;;  %2567 = vmatprep.subr.bf16.mxu1 %v3866_v23  ;;  %v3927_v11 = vld [vmem:[#allocation6 + $0x38] sm:$0xff]   ;;  %v1762_v23 = vld [vmem:[%s4161_s4] sm:$0xf] }
 0x206   :  { %v3928_v17 = vld [vmem:[#allocation6 + $0xb8] sm:$0xff]  }
 0x208   :  { %2486 = vmatpush1.bf16.msra.mxu0 %v3861_v24  ;;  %2568 = vmatpush1.bf16.msra.mxu1 %v3864_v25  ;;  %v1767_v24 = vrot.slane %v1762_v23, %v272_v19  ;;  %v1775_v25 = vrot.slane %v1762_v23, %v280_v35 }
 0x209   :  { %2487 = vmatprep.subr.bf16.mxu0 %v3869_v26  ;;  %2569 = vmatprep.subr.bf16.mxu1 %v3872_v28  ;;  %v1771_v26 = vrot.slane %v1762_v23, %v276_v21  ;;  %v1779_v28 = vrot.slane %v1762_v23, %v284_v22 }
 0x20c   :  { %2488 = vmatpush1.bf16.msra.mxu0 %v3867_v29  ;;  %2570 = vmatpush1.bf16.msra.mxu1 %v3870_v30 }
 0x20d   :  { %2489 = vmatprep.subr.bf16.mxu0 %v3875_v31  ;;  %2571 = vmatprep.subr.bf16.mxu1 %v3878_v32 }
 0x210   :  { %2490 = vmatpush1.bf16.msra.mxu0 %v3873_v33  ;;  %2572 = vmatpush1.bf16.msra.mxu1 %v3876_v34 }
 0x211   :  { %2491 = vmatprep.subr.bf16.mxu0 %v3881_v36  ;;  %2573 = vmatprep.subr.bf16.mxu1 %v3884_v37 }
 0x214   :  { %2492 = vmatpush1.bf16.msra.mxu0 %v3879_v38  ;;  %2574 = vmatpush1.bf16.msra.mxu1 %v3882_v39 }
 0x215   :  { %2493 = vmatprep.subr.bf16.mxu0 %v3887_v41  ;;  %2575 = vmatprep.subr.bf16.mxu1 %v3890_v42 }
 0x218   :  { %2494 = vmatpush1.bf16.msra.mxu0 %v3885_v43  ;;  %2576 = vmatpush1.bf16.msra.mxu1 %v3888_v44 }
 0x219   :  { %2495 = vmatprep.subr.bf16.mxu0 %v3893_v46  ;;  %2577 = vmatprep.subr.bf16.mxu1 %v3896_v47  ;;  %v3279_v47 = vld [vmem:[%s4163_s6] ss:$0 sm:$0xff] }
 0x21c   :  { %2496 = vmatpush1.bf16.msra.mxu0 %v3891_v48  ;;  %2578 = vmatpush1.bf16.msra.mxu1 %v3894_v49 }
 0x21d   :  { %3312 = vmatprep.subr.bf16.mxu0 %v3897_v20  ;;  %3334 = vmatprep.subr.bf16.mxu1 %v3898_v51 }
 0x21f   :  { %2498 = vmatmul.mubr.bf16.vlgmr.msra.gmra.mrb[4].mxu0 %v1632_v54  ;;  %2580 = vmatmul.mubr.bf16.vlgmr.msra.gmra.mrb[4].mxu1 %v1632_v54 }
 0x220   :  { %3313 = vmatpush3.bf16.msra.mxu0 %v3899_v52  ;;  %3335 = vmatpush3.bf16.msra.mxu1 %v3900_v53 }
 0x221   :  { %3314 = vmatprep.subr.bf16.mxu0 %v3901_v27  ;;  %3336 = vmatprep.subr.bf16.mxu1 %v3902_v55 }
 0x224   :  { %3315 = vmatpush3.bf16.msra.mxu0 %v3903_v56  ;;  %3337 = vmatpush3.bf16.msra.mxu1 %v3904_v57 }
 0x225   :  { %3316 = vmatprep.subr.bf16.mxu0 %v3905_v58  ;;  %3338 = vmatprep.subr.bf16.mxu1 %v3906_v59 }
 0x228   :  { %3317 = vmatpush3.bf16.msra.mxu0 %v3907_v60  ;;  %3339 = vmatpush3.bf16.msra.mxu1 %v3908_v61 }
 0x229   :  { %3318 = vmatprep.subr.bf16.mxu0 %v3909_v62  ;;  %3340 = vmatprep.subr.bf16.mxu1 %v3910_v63 }
 0x22c   :  { %3319 = vmatpush3.bf16.msra.mxu0 %v3911_v0  ;;  %3341 = vmatpush3.bf16.msra.mxu1 %v3912_v1 }
 0x22d   :  { %3320 = vmatprep.subr.bf16.mxu0 %v3913_v2  ;;  %3342 = vmatprep.subr.bf16.mxu1 %v3914_v3 }
 0x230   :  { %3321 = vmatpush3.bf16.msra.mxu0 %v3915_v4  ;;  %3343 = vmatpush3.bf16.msra.mxu1 %v3916_v5 }
 0x231   :  { %3322 = vmatprep.subr.bf16.mxu0 %v3917_v6  ;;  %3344 = vmatprep.subr.bf16.mxu1 %v3918_v7 }
 0x234   :  { %3323 = vmatpush3.bf16.msra.mxu0 %v3919_v8  ;;  %3345 = vmatpush3.bf16.msra.mxu1 %v3920_v9 }
 0x235   :  { %3324 = vmatprep.subr.bf16.mxu0 %v3921_v10  ;;  %3346 = vmatprep.subr.bf16.mxu1 %v3922_v12 }
 0x238   :  { %3325 = vmatpush3.bf16.msra.mxu0 %v3923_v13  ;;  %3347 = vmatpush3.bf16.msra.mxu1 %v3924_v14 }
 0x239   :  { %3326 = vmatprep.subr.bf16.mxu0 %v3925_v15  ;;  %3348 = vmatprep.subr.bf16.mxu1 %v3926_v16 }
 0x23c   :  { %3327 = vmatpush3.bf16.msra.mxu0 %v3927_v11  ;;  %3349 = vmatpush3.bf16.msra.mxu1 %v3928_v17 }
 0x2f2   :  { %v2499_v29 = vpop.f32.mrb[4].mxu0  ;;  %v2581_v30 = vpop.f32.mrb[4].mxu1 }
 0x2f3   :  { %v3360_v31 = vadd.f32 %v2499_v29, %v1767_v24  ;;  %v3362_v32 = vadd.f32 %v2581_v30, %v1775_v25  ;;  %v2501_v33 = vpop.f32.mrb[5].mxu0  ;;  %v2583_v34 = vpop.f32.mrb[5].mxu1 }
 0x2f4   :  { %v3361_v36 = vadd.f32 %v2501_v33, %v1771_v26  ;;  %v3363_v37 = vadd.f32 %v2583_v34, %v1779_v28  ;;  %v2503_v38 = vpop.f32.mrb[6].mxu0  ;;  %v2585_v39 = vpop.f32.mrb[6].mxu1 }
 0x2f5   :  { %v2588_v19 = vmax.f32 %v3360_v31, 0.0  ;;  %v2590_v40 = vmax.f32 %v3362_v32, 0.0  ;;  %v2504_v41 = vpop.f32.mrb[7].mxu0  ;;  %v2586_v35 = vpop.f32.mrb[7].mxu1 }
 0x2f6   :  { %v2589_v42 = vmax.f32 %v3361_v36, 0.0  ;;  %v2591_v43 = vmax.f32 %v3363_v37, 0.0 }
 0x2f7   :  { %v2592_v18 = vpack.c.bf16 %v2588_v19, %v2588_v19  ;;  %v2594_v22 = vpack.c.bf16 %v2590_v40, %v2590_v40 }
 0x2f8   :  { %v2593_v21 = vpack.c.bf16 %v2589_v42, %v2589_v42  ;;  %v2595_v44 = vpack.c.bf16 %v2591_v43, %v2591_v43 }
 0x2fa   :  { %2891 = vmatprep.mubr.bf16.mxu0 %v2593_v21  ;;  %2931 = vmatprep.mubr.bf16.mxu1 %v2595_v44 }
 0x2fb   :  { %2892 = vmatmul.mubr.bf16.vlgmr.msra.gmra.mrb[8].mxu0 %v2592_v18  ;;  %2932 = vmatmul.mubr.bf16.vlgmr.msra.gmra.mrb[8].mxu1 %v2594_v22 }
 0x3ce   :  { %v3328_v45 = vpop.f32.mrb[8].mxu0  ;;  %v3350_v46 = vpop.f32.mrb[8].mxu1 }
 0x3cf   :  { %v3329_v48 = vpop.f32.mrb[9].mxu0  ;;  %v3351_v49 = vpop.f32.mrb[9].mxu1 }
 0x3d0   :  { %v3330_v50 = vadd.f32 %v3329_v48, %v3328_v45  ;;  %v3352_v20 = vadd.f32 %v3351_v49, %v3350_v46  ;;  %v3331_v51 = vpop.f32.mrb[10].mxu0  ;;  %v3353_v52 = vpop.f32.mrb[10].mxu1 }
 0x3d1   :  { %v3332_v53 = vpop.f32.mrb[11].mxu0  ;;  %v3354_v54 = vpop.f32.mrb[11].mxu1 }
 0x3d2   :  { %v2894_v27 = vadd.f32 %v3330_v50, %v3279_v47 }
 0x3d4   :  { %v2934_v55 = vadd.f32 %v3352_v20, %v2894_v27 }
 0x3d6   :  { %2939 = vst [vmem:[%s4164_s7] sm:$0xff] %v2934_v55 }
 0x3d7   :  { %2944 = vsyncpa [#allocation3], 1 }
 0x3d8   :  { %2945 = vsyncpa [#allocation5], 1 }

</bundles_post_ra>
